<compile_context>
chip_gen: v6e
topology: v6e:2x2x1
jax: 0.10.0
libtpu: 0.0.40
codegen_flags: <defaults>
</compile_context>

<pallas_src>
import jax
import jax.numpy as jnp
from jax.experimental import pallas as pl
from jax.experimental.pallas import tpu as pltpu

HIDDEN = 768          # BERT hidden size / fc1 in_features
FC1 = 512             # fc1 out_features
NUM_CLASSES = 2       # fc2 out_features
LANE = 128            # TPU lane width: fc2/out padded to this (lane-dense path)
NEG_PAD = -1e9        # bias for the 126 padding "classes" -> vanish in softmax


def _round_up(x, m):
    return ((x + m - 1) // m) * m


def bert_head_kernel(pooled_ref, pw_ref, pb_ref, w1_ref, b1_ref, w2_ref, b2_ref,
                     out_ref):
    """One batch tile: pooler(tanh) -> fc1 -> ReLU -> fc2(128-lane padded)
    -> LogSoftmax.  bf16 MXU inputs, f32 accumulation, f32 elementwise."""
    # Synthetic pooler (stand-in for the external BERT pooler): tanh(x @ Wp + bp)
    cls = jnp.tanh(
        jnp.dot(pooled_ref[...], pw_ref[...], preferred_element_type=jnp.float32)
        + pb_ref[...])

    # fc1 + ReLU (f32 accumulate, f32 elementwise -- also correct on v5e)
    h = jnp.dot(cls.astype(jnp.bfloat16), w1_ref[...],
                preferred_element_type=jnp.float32) + b1_ref[...]
    h = jnp.maximum(h, 0.0)

    # dropout(p=0.1): identity in eval/inference mode (no-op).

    # fc2 padded to 128 output lanes: zero weight columns + -1e9 bias on the
    # padding lanes so they drop out of the softmax below.
    logits = jnp.dot(h.astype(jnp.bfloat16), w2_ref[...],
                     preferred_element_type=jnp.float32) + b2_ref[...]

    # Numerically stable LogSoftmax over the class axis.
    m = jnp.max(logits, axis=1, keepdims=True)
    z = logits - m
    lse = jnp.log(jnp.sum(jnp.exp(z), axis=1, keepdims=True))
    out_ref[...] = z - lse


def bert_arch_forward(pooled, pooler_w, pooler_b, w1, b1, w2, b2, *,
                      batch_tile=128):
    """Fused pooler + BERT_Arch classification head (eval mode)."""
    B = pooled.shape[0]
    tb = min(batch_tile, _round_up(B, 8))      # >= 8 sublanes, <= batch_tile
    b_pad = _round_up(B, tb)
    if b_pad != B:
        pooled = jnp.pad(pooled, ((0, b_pad - B), (0, 0)))

    # bf16 at the call boundary halves HBM traffic on the dominant operands.
    pooled_bf = pooled.astype(jnp.bfloat16)
    pw_bf = pooler_w.astype(jnp.bfloat16)
    w1_bf = w1.astype(jnp.bfloat16)

    # Pad fc2 to lane width 128 (lane-dense MXU output + unmasked stores).
    w2_pad = jnp.zeros((FC1, LANE), jnp.bfloat16).at[:, :NUM_CLASSES].set(
        w2.astype(jnp.bfloat16))
    b2_pad = jnp.full((1, LANE), NEG_PAD, jnp.float32).at[:, :NUM_CLASSES].set(
        b2.reshape(1, NUM_CLASSES).astype(jnp.float32))

    pb = pooler_b.reshape(1, HIDDEN).astype(jnp.float32)
    b1r = b1.reshape(1, FC1).astype(jnp.float32)

    grid = (b_pad // tb,)
    out = pl.pallas_call(
        bert_head_kernel,
        out_shape=jax.ShapeDtypeStruct((b_pad, LANE), jnp.float32),
        grid=grid,
        in_specs=[
            pl.BlockSpec((tb, HIDDEN), lambda i: (i, 0)),      # pooled (tiled)
            pl.BlockSpec((HIDDEN, HIDDEN), lambda i: (0, 0)),  # pooler W (resident)
            pl.BlockSpec((1, HIDDEN), lambda i: (0, 0)),       # pooler b (resident)
            pl.BlockSpec((HIDDEN, FC1), lambda i: (0, 0)),     # W1 (resident)
            pl.BlockSpec((1, FC1), lambda i: (0, 0)),          # b1 (resident)
            pl.BlockSpec((FC1, LANE), lambda i: (0, 0)),       # W2 padded (resident)
            pl.BlockSpec((1, LANE), lambda i: (0, 0)),         # b2 padded (resident)
        ],
        out_specs=pl.BlockSpec((tb, LANE), lambda i: (i, 0)),
        compiler_params=pltpu.CompilerParams(
            dimension_semantics=("parallel",)),
    )(pooled_bf, pw_bf, pb, w1_bf, b1r, w2_pad, b2_pad)

    # Slice back the real batch rows and the 2 real classes.
    return out[:B, :NUM_CLASSES]


def synthetic_bert_encode(sent_id, mask, emb_table):
    """Embedding lookup + masked mean over the sequence: deterministic stand-in
    for the external pretrained BERT encoder.  Its tanh pooler matmul is fused
    into the Pallas kernel above."""
    emb = emb_table[sent_id]                              # (B, S, 768)
    m = mask.astype(jnp.float32)[..., None]               # (B, S, 1)
    return (emb * m).sum(axis=1) / jnp.maximum(m.sum(axis=1), 1.0)


def reference_forward(pooled, pooler_w, pooler_b, w1, b1, w2, b2):
    """Pure-JAX reference with the same bf16-input / f32-accumulate matmuls."""
    bf, f32 = jnp.bfloat16, jnp.float32
    cls = jnp.tanh(jnp.dot(pooled.astype(bf), pooler_w.astype(bf),
                           preferred_element_type=f32) + pooler_b.reshape(1, -1))
    h = jnp.maximum(jnp.dot(cls.astype(bf), w1.astype(bf),
                            preferred_element_type=f32) + b1.reshape(1, -1), 0.0)
    logits = jnp.dot(h.astype(bf), w2.astype(bf),
                     preferred_element_type=f32) + b2.reshape(1, -1)
    return jax.nn.log_softmax(logits, axis=1)


if __name__ == "__main__":
    key = jax.random.PRNGKey(0)
    k_ids, k_emb, k_pw, k_pb, k_w1, k_b1, k_w2, k_b2 = jax.random.split(key, 8)

    B, S, VOCAB = 8, 8, 32

    # forward(sent_id, mask) inputs
    sent_id = jax.random.randint(k_ids, (B, S), 0, VOCAB, dtype=jnp.int32)
    mask = jnp.ones((B, S), dtype=jnp.int32)

    # synthetic deterministic "bert" parameters (stand-in backbone)
    emb_table = jax.random.normal(k_emb, (VOCAB, HIDDEN), jnp.float32)
    pooler_w = jax.random.normal(k_pw, (HIDDEN, HIDDEN), jnp.float32) / jnp.sqrt(HIDDEN)
    pooler_b = jax.random.normal(k_pb, (HIDDEN,), jnp.float32) * 0.02

    # head parameters (nn.Linear(768,512) / nn.Linear(512,2)), stored
    # transposed so the kernel computes x @ W.
    w1 = jax.random.normal(k_w1, (HIDDEN, FC1), jnp.float32) / jnp.sqrt(HIDDEN)
    b1 = jax.random.normal(k_b1, (FC1,), jnp.float32) * 0.02
    w2 = jax.random.normal(k_w2, (FC1, NUM_CLASSES), jnp.float32) / jnp.sqrt(FC1)
    b2 = jax.random.normal(k_b2, (NUM_CLASSES,), jnp.float32) * 0.02

    # "bert" encoder stand-in (plain JAX glue) -> pooled token representation
    pooled = synthetic_bert_encode(sent_id, mask, emb_table)

    # Pallas kernel: fused pooler + classification head
    out = bert_arch_forward(pooled, pooler_w, pooler_b, w1, b1, w2, b2)
    out = jax.block_until_ready(out)

    # correctness checks
    ref = reference_forward(pooled, pooler_w, pooler_b, w1, b1, w2, b2)
    assert out.shape == (B, NUM_CLASSES)
    assert bool(jnp.all(jnp.isfinite(out)))
    assert jnp.allclose(out, ref, atol=5e-3, rtol=5e-3), (out, ref)
    # rows are valid 2-class log-probability distributions
    assert jnp.allclose(jnp.exp(out).sum(axis=1), 1.0, atol=1e-3)

    print("KERNEL_OK")
</pallas_src>

<mosaic_0001>
module attributes {stable_mosaic.version = 11 : i64} {
  func.func @bert_head_kernel(%arg0: i32, %arg1: memref<8x768xbf16, #tpu.memory_space<vmem>>, %arg2: memref<768x768xbf16, #tpu.memory_space<vmem>>, %arg3: memref<1x768xf32, #tpu.memory_space<vmem>>, %arg4: memref<768x512xbf16, #tpu.memory_space<vmem>>, %arg5: memref<1x512xf32, #tpu.memory_space<vmem>>, %arg6: memref<512x128xbf16, #tpu.memory_space<vmem>>, %arg7: memref<1x128xf32, #tpu.memory_space<vmem>>, %arg8: memref<8x128xf32, #tpu.memory_space<vmem>>) attributes {dimension_semantics = [#tpu.dimension_semantics<parallel>], iteration_bounds = array<i64: 1>, scalar_prefetch = 0 : i64, scratch_operands = 0 : i64, tpu.core_type = #tpu.core_type<tc>, window_params = [{transform_indices = @transform_0, window_bounds = array<i64: 8, 768>}, {pipeline_mode = #tpu.pipeline_mode<synchronous>, transform_indices = @transform_1, window_bounds = array<i64: 768, 768>}, {pipeline_mode = #tpu.pipeline_mode<synchronous>, transform_indices = @transform_2, window_bounds = array<i64: 1, 768>}, {pipeline_mode = #tpu.pipeline_mode<synchronous>, transform_indices = @transform_3, window_bounds = array<i64: 768, 512>}, {pipeline_mode = #tpu.pipeline_mode<synchronous>, transform_indices = @transform_4, window_bounds = array<i64: 1, 512>}, {pipeline_mode = #tpu.pipeline_mode<synchronous>, transform_indices = @transform_5, window_bounds = array<i64: 512, 128>}, {pipeline_mode = #tpu.pipeline_mode<synchronous>, transform_indices = @transform_6, window_bounds = array<i64: 1, 128>}, {transform_indices = @transform_7, window_bounds = array<i64: 8, 128>}]} {
    %c0 = arith.constant 0 : index
    %c0_0 = arith.constant 0 : index
    %0 = vector.load %arg1[%c0, %c0_0] : memref<8x768xbf16, #tpu.memory_space<vmem>>, vector<8x768xbf16>
    %c0_1 = arith.constant 0 : index
    %c0_2 = arith.constant 0 : index
    %1 = vector.load %arg2[%c0_1, %c0_2] : memref<768x768xbf16, #tpu.memory_space<vmem>>, vector<768x768xbf16>
    %cst = arith.constant dense<0.000000e+00> : vector<8x768xf32>
    %2 = tpu.matmul %0, %1, %cst {dimension_numbers = #tpu.dot_dimension_numbers<[1], [0], [0], [1], [0, 0, 1, 1], [], []>} : vector<8x768xbf16>, vector<768x768xbf16>, vector<8x768xf32> -> vector<8x768xf32>
    %c0_3 = arith.constant 0 : index
    %c0_4 = arith.constant 0 : index
    %3 = vector.load %arg3[%c0_3, %c0_4] : memref<1x768xf32, #tpu.memory_space<vmem>>, vector<1x768xf32>
    %4 = vector.broadcast %3 : vector<1x768xf32> to vector<8x768xf32>
    %5 = arith.addf %2, %4 : vector<8x768xf32>
    %6 = math.tanh %5 : vector<8x768xf32>
    %7 = arith.truncf %6 : vector<8x768xf32> to vector<8x768xbf16>
    %c0_5 = arith.constant 0 : index
    %c0_6 = arith.constant 0 : index
    %8 = vector.load %arg4[%c0_5, %c0_6] : memref<768x512xbf16, #tpu.memory_space<vmem>>, vector<768x512xbf16>
    %cst_7 = arith.constant dense<0.000000e+00> : vector<8x512xf32>
    %9 = tpu.matmul %7, %8, %cst_7 {dimension_numbers = #tpu.dot_dimension_numbers<[1], [0], [0], [1], [0, 0, 1, 1], [], []>} : vector<8x768xbf16>, vector<768x512xbf16>, vector<8x512xf32> -> vector<8x512xf32>
    %c0_8 = arith.constant 0 : index
    %c0_9 = arith.constant 0 : index
    %10 = vector.load %arg5[%c0_8, %c0_9] : memref<1x512xf32, #tpu.memory_space<vmem>>, vector<1x512xf32>
    %11 = vector.broadcast %10 : vector<1x512xf32> to vector<8x512xf32>
    %12 = arith.addf %9, %11 : vector<8x512xf32>
    %cst_10 = arith.constant 0.000000e+00 : f32
    %13 = vector.broadcast %cst_10 : f32 to vector<8x512xf32>
    %14 = arith.maximumf %12, %13 : vector<8x512xf32>
    %15 = arith.truncf %14 : vector<8x512xf32> to vector<8x512xbf16>
    %c0_11 = arith.constant 0 : index
    %c0_12 = arith.constant 0 : index
    %16 = vector.load %arg6[%c0_11, %c0_12] : memref<512x128xbf16, #tpu.memory_space<vmem>>, vector<512x128xbf16>
    %cst_13 = arith.constant dense<0.000000e+00> : vector<8x128xf32>
    %17 = tpu.matmul %15, %16, %cst_13 {dimension_numbers = #tpu.dot_dimension_numbers<[1], [0], [0], [1], [0, 0, 1, 1], [], []>} : vector<8x512xbf16>, vector<512x128xbf16>, vector<8x128xf32> -> vector<8x128xf32>
    %c0_14 = arith.constant 0 : index
    %c0_15 = arith.constant 0 : index
    %18 = vector.load %arg7[%c0_14, %c0_15] : memref<1x128xf32, #tpu.memory_space<vmem>>, vector<1x128xf32>
    %19 = vector.broadcast %18 : vector<1x128xf32> to vector<8x128xf32>
    %20 = arith.addf %17, %19 : vector<8x128xf32>
    %cst_16 = arith.constant dense<0xFF800000> : vector<8xf32>
    %21 = vector.multi_reduction <maximumf>, %20, %cst_16 [1] : vector<8x128xf32> to vector<8xf32>
    %22 = vector.shape_cast %21 : vector<8xf32> to vector<8x1xf32>
    %23 = vector.broadcast %22 : vector<8x1xf32> to vector<8x128xf32>
    %24 = arith.subf %20, %23 : vector<8x128xf32>
    %25 = math.exp %24 : vector<8x128xf32>
    %cst_17 = arith.constant dense<0.000000e+00> : vector<8xf32>
    %26 = vector.multi_reduction <add>, %25, %cst_17 [1] : vector<8x128xf32> to vector<8xf32>
    %27 = vector.shape_cast %26 : vector<8xf32> to vector<8x1xf32>
    %28 = math.log %27 : vector<8x1xf32>
    %29 = vector.broadcast %28 : vector<8x1xf32> to vector<8x128xf32>
    %30 = arith.subf %24, %29 : vector<8x128xf32>
    %c0_18 = arith.constant 0 : index
    %c0_19 = arith.constant 0 : index
    %31 = vector.load %arg8[%c0_18, %c0_19] : memref<8x128xf32, #tpu.memory_space<vmem>>, vector<8x128xf32>
    tpu.vector_store %arg8[%c0_18, %c0_19], %30 {strides = array<i32>} : memref<8x128xf32, #tpu.memory_space<vmem>>, vector<8x128xf32>,
    return
  }
  func.func @transform_0(%arg0: i32) -> (i32, i32) {
    %c0_i32 = arith.constant 0 : i32
    %c0_i32_0 = arith.constant 0 : i32
    return %arg0, %c0_i32 : i32, i32
  }
  func.func @transform_1(%arg0: i32) -> (i32, i32) {
    %c0_i32 = arith.constant 0 : i32
    %c0_i32_0 = arith.constant 0 : i32
    %c0_i32_1 = arith.constant 0 : i32
    return %c0_i32, %c0_i32_0 : i32, i32
  }
  func.func @transform_2(%arg0: i32) -> (i32, i32) {
    %c0_i32 = arith.constant 0 : i32
    %c0_i32_0 = arith.constant 0 : i32
    %c0_i32_1 = arith.constant 0 : i32
    return %c0_i32, %c0_i32_0 : i32, i32
  }
  func.func @transform_3(%arg0: i32) -> (i32, i32) {
    %c0_i32 = arith.constant 0 : i32
    %c0_i32_0 = arith.constant 0 : i32
    %c0_i32_1 = arith.constant 0 : i32
    return %c0_i32, %c0_i32_0 : i32, i32
  }
  func.func @transform_4(%arg0: i32) -> (i32, i32) {
    %c0_i32 = arith.constant 0 : i32
    %c0_i32_0 = arith.constant 0 : i32
    %c0_i32_1 = arith.constant 0 : i32
    return %c0_i32, %c0_i32_0 : i32, i32
  }
  func.func @transform_5(%arg0: i32) -> (i32, i32) {
    %c0_i32 = arith.constant 0 : i32
    %c0_i32_0 = arith.constant 0 : i32
    %c0_i32_1 = arith.constant 0 : i32
    return %c0_i32, %c0_i32_0 : i32, i32
  }
  func.func @transform_6(%arg0: i32) -> (i32, i32) {
    %c0_i32 = arith.constant 0 : i32
    %c0_i32_0 = arith.constant 0 : i32
    %c0_i32_1 = arith.constant 0 : i32
    return %c0_i32, %c0_i32_0 : i32, i32
  }
  func.func @transform_7(%arg0: i32) -> (i32, i32) {
    %c0_i32 = arith.constant 0 : i32
    %c0_i32_0 = arith.constant 0 : i32
    return %arg0, %c0_i32 : i32, i32
  }
}

</mosaic_0001>

<bundles_post_ra>
// kernel: tpu_custom_call.1
= control target key start
LH: loop header
LB: loop body
LE: loop exit
PB: predicated region body
PF: predicated region fallthrough
CT: control target
= control target key end

     0   :  { %12 = vsyncpa [#allocation3], 0  ;;  %s5805_s0 = inlined_call_operand.hbm [shape: bf16[8,768], index: 0, kind: input, shape index: {}]   ;;  %s5806_s1 = inlined_call_operand.hbm [shape: bf16[768,768], index: 1, kind: input, shape index: {}]   ;;  %s5807_s2 = inlined_call_operand.hbm [shape: f32[1,768], index: 2, kind: input, shape index: {}]   ;;  %s5808_s3 = inlined_call_operand.hbm [shape: bf16[768,512], index: 3, kind: input, shape index: {}]   ;;  %s5809_s4 = inlined_call_operand.hbm [shape: f32[1,512], index: 4, kind: input, shape index: {}]   ;;  %s5810_s5 = inlined_call_operand.hbm [shape: bf16[512,128], index: 5, kind: input, shape index: {}]   ;;  %s5811_s6 = inlined_call_operand.hbm [shape: f32[1,128], index: 6, kind: input, shape index: {}]   ;;  %s5812_s7 = inlined_call_operand.hbm [shape: f32[8,128], index: 7, kind: output, shape index: {}]  }
   0x1   :  { %13 = vsyncpa [#allocation6], 0 }
   0x2   :  { %14 = vsyncpa [#allocation9], 0 }
   0x3   :  { %15 = vsyncpa [#allocation12], 0 }
   0x4   :  { %16 = vsyncpa [#allocation4], 0  ;;  %s5601_s24 = smov [#allocation5]  }
   0x5   :  { %s32_s25 = sshll.u32 %s5601_s24, 4  ;;  %s33_s25 = int_to_ptr.vmem [resolvable:$true] %s32_s25 }
   0x6   :  { %s5439_s26 = scalar_lea.vmem %s33_s25, 36864  ;;  %p5444_p1 = scmp.lt.s32.totalorder %s33_s25, %s33_s25 }
   0x7   :  { %p5440_p0 = scmp.ne.s32.totalorder %s33_s25, %s5439_s26  ;;  %p5445_p2 = scmp.lt.s32.totalorder %s5439_s26, %s5439_s26 }
   0x9   :  { %p5446_p3 = por %p5445_p2, %p5444_p1 }
   0xb   :  { %p5447_p4 = pnand %p5446_p3, %p5440_p0 }
   0xd   :  { %5450 = shalt.err (!%p5447_p4)
}
   0xe   :  { %s5602_s27 = smov 384   ;;  %s5603_s28 = smov 24  }
   0xf   :  { %38 = dma.hbm_to_vmem [thread:$0]  %s5806_s1, 36864, %s33_s25, [#allocation6], %s5602_s27, %s5602_s27, %s5603_s28  }
  0x10   :  { %s5604_s8 = smov [#allocation8]  }
  0x11   :  { %s54_s9 = sshll.u32 %s5604_s8, 4  ;;  %s55_s9 = int_to_ptr.vmem [resolvable:$true] %s54_s9 }
  0x12   :  { %s5459_s10 = scalar_lea.vmem %s55_s9, 24576  ;;  %p5464_p6 = scmp.lt.s32.totalorder %s55_s9, %s55_s9 }
  0x13   :  { %p5460_p5 = scmp.ne.s32.totalorder %s55_s9, %s5459_s10  ;;  %p5465_p7 = scmp.lt.s32.totalorder %s5459_s10, %s5459_s10 }
  0x15   :  { %p5466_p8 = por %p5465_p7, %p5464_p6 }
  0x17   :  { %p5467_p9 = pnand %p5466_p8, %p5460_p5 }
  0x19   :  { %5470 = shalt.err (!%p5467_p9)
}
  0x1a   :  { %s5605_s11 = smov 256   ;;  %s5606_s12 = smov 16  }
  0x1b   :  { %60 = dma.hbm_to_vmem [thread:$0]  %s5808_s3, 24576, %s55_s9, [#allocation9], %s5605_s11, %s5605_s11, %s5606_s12  }
  0x1c   :  { %s5607_s15 = smov [#allocation11]  }
  0x1d   :  { %s76_s16 = sshll.u32 %s5607_s15, 4  ;;  %s77_s16 = int_to_ptr.vmem [resolvable:$true] %s76_s16 }
  0x1e   :  { %s5479_s1 = scalar_lea.vmem %s77_s16, 4096  ;;  %p5484_p11 = scmp.lt.s32.totalorder %s77_s16, %s77_s16 }
  0x1f   :  { %p5480_p10 = scmp.ne.s32.totalorder %s77_s16, %s5479_s1  ;;  %p5485_p12 = scmp.lt.s32.totalorder %s5479_s1, %s5479_s1 }
  0x21   :  { %p5486_p13 = por %p5485_p12, %p5484_p11 }
  0x23   :  { %p5487_p0 = pnand %p5486_p13, %p5480_p10 }
  0x25   :  { %5490 = shalt.err (!%p5487_p0)
}
  0x26   :  { %s5608_s17 = smov 64   ;;  %s5609_s18 = smov 4  }
  0x27   :  { %82 = dma.hbm_to_vmem [thread:$0]  %s5810_s5, 4096, %s77_s16, [#allocation12], %s5608_s17, %s5608_s17, %s5609_s18  }
  0x28   :  { %s5610_s21 = smov [#allocation2]   ;;  %s5611_s3 = smov [#allocation7]  }
  0x29   :  { %s23_s22 = sshll.u32 %s5610_s21, 4  ;;  %s45_s23 = sshll.u32 %s5611_s3, 4  ;;  %s24_s22 = int_to_ptr.vmem [resolvable:$true] %s23_s22  ;;  %s46_s23 = int_to_ptr.vmem [resolvable:$true] %s45_s23 }
  0x2a   :  { %s5499_s24 = scalar_lea.vmem %s24_s22, 384  ;;  %p5504_p2 = scmp.lt.s32.totalorder %s24_s22, %s24_s22 }
  0x2b   :  { %p5500_p1 = scmp.ne.s32.totalorder %s24_s22, %s5499_s24  ;;  %p5505_p3 = scmp.lt.s32.totalorder %s5499_s24, %s5499_s24 }
  0x2d   :  { %p5506_p4 = por %p5505_p3, %p5504_p2 }
  0x2f   :  { %p5507_p5 = pnand %p5506_p4, %p5500_p1 }
  0x31   :  { %5510 = shalt.err (!%p5507_p5)
}
  0x32   :  { %26 = dma.hbm_to_vmem [thread:$0]  %s5805_s0, 384, %s24_s22, [#allocation3]  }
  0x33   :  { %s5519_s27 = scalar_lea.vmem %s46_s23, 96  ;;  %p5524_p7 = scmp.lt.s32.totalorder %s46_s23, %s46_s23 }
  0x34   :  { %p5520_p6 = scmp.ne.s32.totalorder %s46_s23, %s5519_s27  ;;  %p5525_p8 = scmp.lt.s32.totalorder %s5519_s27, %s5519_s27 }
  0x36   :  { %p5526_p9 = por %p5525_p8, %p5524_p7 }
  0x38   :  { %p5527_p10 = pnand %p5526_p9, %p5520_p6 }
  0x3a   :  { %5530 = shalt.err (!%p5527_p10)
}
  0x3b   :  { %48 = dma.hbm_to_vmem [thread:$0]  %s5807_s2, 96, %s46_s23, [#allocation6]  }
  0x3c   :  { %s5612_s29 = smov [#allocation10]   ;;  %s5613_s8 = smov [#allocation13]  }
  0x3d   :  { %s67_s30 = sshll.u32 %s5612_s29, 4  ;;  %s89_s9 = sshll.u32 %s5613_s8, 4  ;;  %s68_s30 = int_to_ptr.vmem [resolvable:$true] %s67_s30  ;;  %s90_s9 = int_to_ptr.vmem [resolvable:$true] %s89_s9 }
  0x3e   :  { %s5539_s10 = scalar_lea.vmem %s68_s30, 64  ;;  %p5544_p12 = scmp.lt.s32.totalorder %s68_s30, %s68_s30 }
  0x3f   :  { %p5540_p11 = scmp.ne.s32.totalorder %s68_s30, %s5539_s10  ;;  %p5545_p13 = scmp.lt.s32.totalorder %s5539_s10, %s5539_s10 }
  0x41   :  { %p5546_p0 = por %p5545_p13, %p5544_p12 }
  0x43   :  { %p5547_p1 = pnand %p5546_p0, %p5540_p11 }
  0x45   :  { %5550 = shalt.err (!%p5547_p1)
}
  0x46   :  { %70 = dma.hbm_to_vmem [thread:$0]  %s5809_s4, 64, %s68_s30, [#allocation9]  }
  0x47   :  { %s5559_s12 = scalar_lea.vmem %s90_s9, 16  ;;  %s5563_s2 = scalar_lea.vmem %s90_s9, 32 }
  0x48   :  { %p5560_p2 = scmp.ne.s32.totalorder %s90_s9, %s5559_s12  ;;  %p5564_p3 = scmp.lt.s32.totalorder %s90_s9, %s90_s9 }
  0x49   :  { %p5565_p4 = scmp.lt.s32.totalorder %s5563_s2, %s5559_s12 }
  0x4b   :  { %p5566_p5 = por %p5565_p4, %p5564_p3 }
  0x4d   :  { %p5567_p6 = pnand %p5566_p5, %p5560_p2 }
  0x4f   :  { %5570 = shalt.err (!%p5567_p6)
}
  0x50   :  { %92 = dma.hbm_to_vmem [thread:$0]  %s5811_s6, 16, %s90_s9, [#allocation12]  }
  0x51   :  { %5591 = dma.done.wait [#allocation3], 384  }
  0x52   :  { %5592 = vsyncadd [#allocation3], 4294966912 }
  0x53   :  { %5593 = dma.done.wait [#allocation6], 36960  }
  0x54   :  { %5594 = vsyncadd [#allocation6], 4294930336 }
  0x55   :  { %5595 = dma.done.wait [#allocation9], 24640  }
  0x56   :  { %5596 = vsyncadd [#allocation9], 4294942656 }
  0x57   :  { %5597 = dma.done.wait [#allocation12], 4112  }
  0x58   :  { %5598 = vsyncadd [#allocation12], 4294963184  ;;  %v4657_v0 = vld [vmem:[#allocation5 + $0x154] ss:$24 sps:$4 sm:$0xff]   ;;  %v4659_v1 = vld [vmem:[#allocation5 + $0x150] ss:$24 sps:$4 sm:$0xff]  }
  0x59   :  { %1899 = vmatprep.subr.bf16.mxu0 %v4657_v0  ;;  %v4660_v2 = vld [vmem:[#allocation5 + $0x454] ss:$24 sps:$4 sm:$0xff]   ;;  %v4662_v3 = vld [vmem:[#allocation5 + $0x450] ss:$24 sps:$4 sm:$0xff]   ;;  %v4663_v4 = vld [vmem:[#allocation5 + $0x124] ss:$24 sps:$4 sm:$0xff]  }
  0x5a   :  { %1900 = vmatpush1.bf16.msra.mxu0 %v4659_v1  ;;  %v4665_v5 = vld [vmem:[#allocation5 + $0x120] ss:$24 sps:$4 sm:$0xff]   ;;  %1940 = vmatprep.subr.bf16.mxu1 %v4660_v2  ;;  %v4666_v6 = vld [vmem:[#allocation5 + $0x424] ss:$24 sps:$4 sm:$0xff]   ;;  %v4669_v8 = vld [vmem:[#allocation5 + $0xf4] ss:$24 sps:$4 sm:$0xff]  }
  0x5b   :  { %1941 = vmatpush1.bf16.msra.mxu1 %v4662_v3  ;;  %1901 = vmatprep.subr.bf16.mxu0 %v4663_v4  ;;  %v4668_v7 = vld [vmem:[#allocation5 + $0x420] ss:$24 sps:$4 sm:$0xff]   ;;  %v4671_v9 = vld [vmem:[#allocation5 + $0xf0] ss:$24 sps:$4 sm:$0xff]   ;;  %v4672_v10 = vld [vmem:[#allocation5 + $0x3f4] ss:$24 sps:$4 sm:$0xff]  }
  0x5c   :  { %1942 = vmatprep.subr.bf16.mxu1 %v4666_v6  ;;  %v4675_v11 = vld [vmem:[#allocation5 + $0xc4] ss:$24 sps:$4 sm:$0xff]   ;;  %v4674_v12 = vld [vmem:[#allocation5 + $0x3f0] ss:$24 sps:$4 sm:$0xff]   ;;  %v4677_v14 = vld [vmem:[#allocation5 + $0xc0] ss:$24 sps:$4 sm:$0xff]  }
  0x5d   :  { %v4678_v13 = vld [vmem:[#allocation5 + $0x3c4] ss:$24 sps:$4 sm:$0xff]   ;;  %v4681_v15 = vld [vmem:[#allocation5 + $0x94] ss:$24 sps:$4 sm:$0xff]   ;;  %v4680_v16 = vld [vmem:[#allocation5 + $0x3c0] ss:$24 sps:$4 sm:$0xff]  }
  0x5e   :  { %1902 = vmatpush1.bf16.msra.mxu0 %v4665_v5  ;;  %v4684_v17 = vld [vmem:[#allocation5 + $0x394] ss:$24 sps:$4 sm:$0xff]   ;;  %v4683_v18 = vld [vmem:[#allocation5 + $0x90] ss:$24 sps:$4 sm:$0xff]   ;;  %v4687_v19 = vld [vmem:[#allocation5 + $0x64] ss:$24 sps:$4 sm:$0xff]  }
  0x5f   :  { %1903 = vmatprep.subr.bf16.mxu0 %v4669_v8  ;;  %1943 = vmatpush1.bf16.msra.mxu1 %v4668_v7  ;;  %v4686_v20 = vld [vmem:[#allocation5 + $0x390] ss:$24 sps:$4 sm:$0xff]   ;;  %v4690_v21 = vld [vmem:[#allocation5 + $0x364] ss:$24 sps:$4 sm:$0xff]   ;;  %v4689_v22 = vld [vmem:[#allocation5 + $0x60] ss:$24 sps:$4 sm:$0xff]  }
  0x60   :  { %1944 = vmatprep.subr.bf16.mxu1 %v4672_v10  ;;  %v4693_v23 = vld [vmem:[#allocation5 + $0x34] ss:$24 sps:$4 sm:$0xff]   ;;  %v4692_v24 = vld [vmem:[#allocation5 + $0x360] ss:$24 sps:$4 sm:$0xff]   ;;  %v4695_v26 = vld [vmem:[#allocation5 + $0x30] ss:$24 sps:$4 sm:$0xff]  }
  0x61   :  { %v4696_v25 = vld [vmem:[#allocation5 + $0x334] ss:$24 sps:$4 sm:$0xff]   ;;  %v4699_v27 = vld [vmem:[#allocation5 + $0x4] ss:$24 sps:$4 sm:$0xff]   ;;  %v4698_v28 = vld [vmem:[#allocation5 + $0x330] ss:$24 sps:$4 sm:$0xff]  }
  0x62   :  { %1904 = vmatpush1.bf16.msra.mxu0 %v4671_v9  ;;  %v4702_v29 = vld [vmem:[#allocation5 + $0x304] ss:$24 sps:$4 sm:$0xff]   ;;  %v4701_v30 = vld [vmem:[#allocation5] ss:$24 sps:$4 sm:$0xff]   ;;  %v4705_v31 = vld [vmem:[#allocation5 + $0x2d4] ss:$24 sps:$4 sm:$0xff]  }
  0x63   :  { %1905 = vmatprep.subr.bf16.mxu0 %v4675_v11  ;;  %1945 = vmatpush1.bf16.msra.mxu1 %v4674_v12  ;;  %v4704_v32 = vld [vmem:[#allocation5 + $0x300] ss:$24 sps:$4 sm:$0xff]   ;;  %v4708_v33 = vld [vmem:[#allocation5 + $0x5d4] ss:$24 sps:$4 sm:$0xff]   ;;  %v4707_v34 = vld [vmem:[#allocation5 + $0x2d0] ss:$24 sps:$4 sm:$0xff]  }
  0x64   :  { %1946 = vmatprep.subr.bf16.mxu1 %v4678_v13  ;;  %v4711_v35 = vld [vmem:[#allocation5 + $0x2a4] ss:$24 sps:$4 sm:$0xff]   ;;  %v4710_v36 = vld [vmem:[#allocation5 + $0x5d0] ss:$24 sps:$4 sm:$0xff]   ;;  %v4713_v38 = vld [vmem:[#allocation5 + $0x2a0] ss:$24 sps:$4 sm:$0xff]  }
  0x65   :  { %v4714_v37 = vld [vmem:[#allocation5 + $0x5a4] ss:$24 sps:$4 sm:$0xff]   ;;  %v4717_v39 = vld [vmem:[#allocation5 + $0x274] ss:$24 sps:$4 sm:$0xff]   ;;  %v4716_v40 = vld [vmem:[#allocation5 + $0x5a0] ss:$24 sps:$4 sm:$0xff]  }
  0x66   :  { %1906 = vmatpush1.bf16.msra.mxu0 %v4677_v14  ;;  %v4720_v41 = vld [vmem:[#allocation5 + $0x574] ss:$24 sps:$4 sm:$0xff]   ;;  %v4719_v42 = vld [vmem:[#allocation5 + $0x270] ss:$24 sps:$4 sm:$0xff]   ;;  %v4723_v43 = vld [vmem:[#allocation5 + $0x244] ss:$24 sps:$4 sm:$0xff]  }
  0x67   :  { %1907 = vmatprep.subr.bf16.mxu0 %v4681_v15  ;;  %1947 = vmatpush1.bf16.msra.mxu1 %v4680_v16  ;;  %v4722_v44 = vld [vmem:[#allocation5 + $0x570] ss:$24 sps:$4 sm:$0xff]   ;;  %v4726_v45 = vld [vmem:[#allocation5 + $0x544] ss:$24 sps:$4 sm:$0xff]   ;;  %v4725_v47 = vld [vmem:[#allocation5 + $0x240] ss:$24 sps:$4 sm:$0xff]  }
  0x68   :  { %1948 = vmatprep.subr.bf16.mxu1 %v4684_v17  ;;  %v115_v46 = vld [vmem:[#allocation2] sm:$0xff]  ;;  %v116_v50 = vld [vmem:[#allocation2 + $0x8] sm:$0xff]  ;;  %v4728_v51 = vld [vmem:[#allocation5 + $0x540] ss:$24 sps:$4 sm:$0xff]   ;;  %s5614_s4 = smov [#allocation14]  }
  0x69   :  { %v5676_v48 = vcombine.high %v115_v46, %v115_v46  ;;  %v4729_v49 = vld [vmem:[#allocation5 + $0x214] ss:$24 sps:$4 sm:$0xff]   ;;  %v5679_v52 = vcombine.high %v116_v50, %v116_v50  ;;  %v4731_v54 = vld [vmem:[#allocation5 + $0x210] ss:$24 sps:$4 sm:$0xff]   ;;  %v4735_v55 = vld [vmem:[#allocation5 + $0x1e4] ss:$24 sps:$4 sm:$0xff]   ;;  %v5682_v5 = vcombine.low %v115_v46, %v115_v46  ;;  %v5684_v8 = vcombine.low %v116_v50, %v116_v50 }
  0x6a   :  { %1908 = vmatpush1.bf16.msra.mxu0 %v4683_v18  ;;  %v4732_v53 = vld [vmem:[#allocation5 + $0x514] ss:$24 sps:$4 sm:$0xff]   ;;  %v4734_v56 = vld [vmem:[#allocation5 + $0x510] ss:$24 sps:$4 sm:$0xff]   ;;  %v4738_v57 = vld [vmem:[#allocation5 + $0x4e4] ss:$24 sps:$4 sm:$0xff]  }
  0x6b   :  { %1909 = vmatprep.subr.bf16.mxu0 %v4687_v19  ;;  %1949 = vmatpush1.bf16.msra.mxu1 %v4686_v20  ;;  %v4737_v58 = vld [vmem:[#allocation5 + $0x1e0] ss:$24 sps:$4 sm:$0xff]   ;;  %v4741_v59 = vld [vmem:[#allocation5 + $0x1b4] ss:$24 sps:$4 sm:$0xff]   ;;  %v4743_v62 = vld [vmem:[#allocation5 + $0x1b0] ss:$24 sps:$4 sm:$0xff]  }
  0x6c   :  { %1950 = vmatprep.subr.bf16.mxu1 %v4690_v21  ;;  %1931 = vmatprep.mubr.bf16.mxu0 %v5676_v48  ;;  %v4740_v60 = vld [vmem:[#allocation5 + $0x4e0] ss:$24 sps:$4 sm:$0xff]   ;;  %v4744_v61 = vld [vmem:[#allocation5 + $0x4b4] ss:$24 sps:$4 sm:$0xff]   ;;  %v4747_v63 = vld [vmem:[#allocation5 + $0x184] ss:$24 sps:$4 sm:$0xff]  }
  0x6d   :  { %1972 = vmatprep.mubr.bf16.mxu1 %v5679_v52  ;;  %v4746_v0 = vld [vmem:[#allocation5 + $0x4b0] ss:$24 sps:$4 sm:$0xff]   ;;  %v4750_v1 = vld [vmem:[#allocation5 + $0x484] ss:$24 sps:$4 sm:$0xff]   ;;  %v4749_v2 = vld [vmem:[#allocation5 + $0x180] ss:$24 sps:$4 sm:$0xff]  }
  0x6e   :  { %1910 = vmatpush1.bf16.msra.mxu0 %v4689_v22  ;;  %v4757_v3 = vld [vmem:[#allocation5 + $0x754] ss:$24 sps:$4 sm:$0xff]   ;;  %v4753_v4 = vld [vmem:[#allocation5 + $0x480] ss:$24 sps:$4 sm:$0xff]   ;;  %v4755_v7 = vld [vmem:[#allocation5 + $0x750] ss:$24 sps:$4 sm:$0xff]  }
  0x6f   :  { %1911 = vmatprep.subr.bf16.mxu0 %v4693_v23  ;;  %1951 = vmatpush1.bf16.msra.mxu1 %v4692_v24  ;;  %v4762_v6 = vld [vmem:[#allocation5 + $0x15c] ss:$24 sps:$4 sm:$0xff]   ;;  %v4760_v10 = vld [vmem:[#allocation5 + $0x158] ss:$24 sps:$4 sm:$0xff]   ;;  %v4768_v11 = vld [vmem:[#allocation5 + $0x12c] ss:$24 sps:$4 sm:$0xff]  }
  0x70   :  { %1952 = vmatprep.subr.bf16.mxu1 %v4696_v25  ;;  %v4765_v9 = vld [vmem:[#allocation5 + $0x724] ss:$24 sps:$4 sm:$0xff]   ;;  %v4763_v12 = vld [vmem:[#allocation5 + $0x720] ss:$24 sps:$4 sm:$0xff]   ;;  %v4771_v13 = vld [vmem:[#allocation5 + $0x6f4] ss:$24 sps:$4 sm:$0xff]  }
  0x71   :  { %v4766_v14 = vld [vmem:[#allocation5 + $0x128] ss:$24 sps:$4 sm:$0xff]   ;;  %v4774_v15 = vld [vmem:[#allocation5 + $0xfc] ss:$24 sps:$4 sm:$0xff]   ;;  %v4772_v18 = vld [vmem:[#allocation5 + $0xf8] ss:$24 sps:$4 sm:$0xff]  }
  0x72   :  { %1912 = vmatpush1.bf16.msra.mxu0 %v4695_v26  ;;  %v4769_v16 = vld [vmem:[#allocation5 + $0x6f0] ss:$24 sps:$4 sm:$0xff]   ;;  %v4777_v17 = vld [vmem:[#allocation5 + $0x6c4] ss:$24 sps:$4 sm:$0xff]   ;;  %v4775_v20 = vld [vmem:[#allocation5 + $0x6c0] ss:$24 sps:$4 sm:$0xff]  }
  0x73   :  { %1913 = vmatprep.subr.bf16.mxu0 %v4699_v27  ;;  %1953 = vmatpush1.bf16.msra.mxu1 %v4698_v28  ;;  %v4780_v19 = vld [vmem:[#allocation5 + $0xcc] ss:$24 sps:$4 sm:$0xff]   ;;  %v4778_v22 = vld [vmem:[#allocation5 + $0xc8] ss:$24 sps:$4 sm:$0xff]   ;;  %v4786_v23 = vld [vmem:[#allocation5 + $0x9c] ss:$24 sps:$4 sm:$0xff]  }
  0x74   :  { %1954 = vmatprep.subr.bf16.mxu1 %v4702_v29  ;;  %v4783_v21 = vld [vmem:[#allocation5 + $0x694] ss:$24 sps:$4 sm:$0xff]   ;;  %v4781_v24 = vld [vmem:[#allocation5 + $0x690] ss:$24 sps:$4 sm:$0xff]   ;;  %v4789_v25 = vld [vmem:[#allocation5 + $0x664] ss:$24 sps:$4 sm:$0xff]  }
  0x75   :  { %v4784_v26 = vld [vmem:[#allocation5 + $0x98] ss:$24 sps:$4 sm:$0xff]   ;;  %v4792_v27 = vld [vmem:[#allocation5 + $0x6c] ss:$24 sps:$4 sm:$0xff]   ;;  %v4822_v50 = vld [vmem:[#allocation5 + $0x27c] ss:$24 sps:$4 sm:$0xff]  }
  0x76   :  { %1914 = vmatpush1.bf16.msra.mxu0 %v4701_v30  ;;  %v4787_v28 = vld [vmem:[#allocation5 + $0x660] ss:$24 sps:$4 sm:$0xff]   ;;  %v4795_v29 = vld [vmem:[#allocation5 + $0x634] ss:$24 sps:$4 sm:$0xff]   ;;  %s4068_s6 = sshll.u32 %s5614_s4, 4  ;;  %s4069_s6 = int_to_ptr.vmem [resolvable:$true] %s4068_s6 }
  0x77   :  { %1915 = vmatprep.subr.bf16.mxu0 %v4705_v31  ;;  %1955 = vmatpush1.bf16.msra.mxu1 %v4704_v32  ;;  %v4790_v30 = vld [vmem:[#allocation5 + $0x68] ss:$24 sps:$4 sm:$0xff]   ;;  %v4798_v31 = vld [vmem:[#allocation5 + $0x3c] ss:$24 sps:$4 sm:$0xff]   ;;  %s5571_s15 = scalar_lea.vmem %s4069_s6, 128  ;;  %p5576_p8 = scmp.lt.s32.totalorder %s4069_s6, %s4069_s6 }
  0x78   :  { %1956 = vmatprep.subr.bf16.mxu1 %v4708_v33  ;;  %v5689_v32 = vld [vmem:[#allocation2 + $0x10] sm:$0xff]  ;;  %v4793_v33 = vld [vmem:[#allocation5 + $0x630] ss:$24 sps:$4 sm:$0xff]   ;;  %p5572_p7 = scmp.ne.s32.totalorder %s4069_s6, %s5571_s15  ;;  %p5577_p9 = scmp.lt.s32.totalorder %s5571_s15, %s5571_s15 }
  0x79   :  { %v4811_v46 = vld [vmem:[#allocation5 + $0x8a0] ss:$24 sps:$4 sm:$0xff]  }
  0x7a   :  { %1916 = vmatpush2.bf16.msra.mxu0 %v4707_v34  ;;  %v5693_v34 = vcombine.high %v5689_v32, %v5689_v32  ;;  %p5578_p10 = por %p5577_p9, %p5576_p8 }
  0x7b   :  { %1917 = vmatprep.subr.bf16.mxu0 %v4711_v35  ;;  %1957 = vmatpush2.bf16.msra.mxu1 %v4710_v36  ;;  %v4801_v35 = vld [vmem:[#allocation5 + $0x604] ss:$24 sps:$4 sm:$0xff]   ;;  %v4796_v36 = vld [vmem:[#allocation5 + $0x38] ss:$24 sps:$4 sm:$0xff]  }
  0x7c   :  { %1958 = vmatprep.subr.bf16.mxu1 %v4714_v37  ;;  %v4804_v37 = vld [vmem:[#allocation5 + $0xc] ss:$24 sps:$4 sm:$0xff]   ;;  %p5579_p11 = pnand %p5578_p10, %p5572_p7 }
  0x7e   :  { %1918 = vmatpush2.bf16.msra.mxu0 %v4713_v38  ;;  %v4799_v38 = vld [vmem:[#allocation5 + $0x600] ss:$24 sps:$4 sm:$0xff]  }
  0x7f   :  { %1919 = vmatprep.subr.bf16.mxu0 %v4717_v39  ;;  %1959 = vmatpush2.bf16.msra.mxu1 %v4716_v40  ;;  %v4807_v39 = vld [vmem:[#allocation5 + $0x8d4] ss:$24 sps:$4 sm:$0xff]   ;;  %v4802_v40 = vld [vmem:[#allocation5 + $0x8] ss:$24 sps:$4 sm:$0xff]  }
  0x80   :  { %1960 = vmatprep.subr.bf16.mxu1 %v4720_v41  ;;  %v4810_v41 = vld [vmem:[#allocation5 + $0x2dc] ss:$24 sps:$4 sm:$0xff]  }
  0x82   :  { %1920 = vmatpush2.bf16.msra.mxu0 %v4719_v42  ;;  %v4805_v42 = vld [vmem:[#allocation5 + $0x8d0] ss:$24 sps:$4 sm:$0xff]  }
  0x83   :  { %1921 = vmatprep.subr.bf16.mxu0 %v4723_v43  ;;  %1961 = vmatpush2.bf16.msra.mxu1 %v4722_v44  ;;  %v4813_v43 = vld [vmem:[#allocation5 + $0x8a4] ss:$24 sps:$4 sm:$0xff]   ;;  %v4808_v44 = vld [vmem:[#allocation5 + $0x2d8] ss:$24 sps:$4 sm:$0xff]  }
  0x84   :  { %1962 = vmatprep.subr.bf16.mxu1 %v4726_v45  ;;  %v4816_v45 = vld [vmem:[#allocation5 + $0x2ac] ss:$24 sps:$4 sm:$0xff]  }
  0x86   :  { %1922 = vmatpush2.bf16.msra.mxu0 %v4725_v47  ;;  %v4819_v47 = vld [vmem:[#allocation5 + $0x874] ss:$24 sps:$4 sm:$0xff]  }
  0x87   :  { %1923 = vmatprep.subr.bf16.mxu0 %v4729_v49  ;;  %1963 = vmatpush2.bf16.msra.mxu1 %v4728_v51  ;;  %v4814_v49 = vld [vmem:[#allocation5 + $0x2a8] ss:$24 sps:$4 sm:$0xff]  }
  0x88   :  { %1964 = vmatprep.subr.bf16.mxu1 %v4732_v53  ;;  %v4817_v51 = vld [vmem:[#allocation5 + $0x870] ss:$24 sps:$4 sm:$0xff]   ;;  %v4825_v53 = vld [vmem:[#allocation5 + $0x844] ss:$24 sps:$4 sm:$0xff]  }
  0x8a   :  { %1924 = vmatpush2.bf16.msra.mxu0 %v4731_v54  ;;  %v4820_v54 = vld [vmem:[#allocation5 + $0x278] ss:$24 sps:$4 sm:$0xff]  }
  0x8b   :  { %1925 = vmatprep.subr.bf16.mxu0 %v4735_v55  ;;  %1965 = vmatpush2.bf16.msra.mxu1 %v4734_v56  ;;  %v4828_v55 = vld [vmem:[#allocation5 + $0x24c] ss:$24 sps:$4 sm:$0xff]   ;;  %v4823_v56 = vld [vmem:[#allocation5 + $0x840] ss:$24 sps:$4 sm:$0xff]  }
  0x8c   :  { %1966 = vmatprep.subr.bf16.mxu1 %v4738_v57  ;;  %v4831_v57 = vld [vmem:[#allocation5 + $0x814] ss:$24 sps:$4 sm:$0xff]  }
  0x8e   :  { %1926 = vmatpush2.bf16.msra.mxu0 %v4737_v58  ;;  %v4826_v58 = vld [vmem:[#allocation5 + $0x248] ss:$24 sps:$4 sm:$0xff]  }
  0x8f   :  { %1927 = vmatprep.subr.bf16.mxu0 %v4741_v59  ;;  %1967 = vmatpush2.bf16.msra.mxu1 %v4740_v60  ;;  %v4834_v59 = vld [vmem:[#allocation5 + $0x21c] ss:$24 sps:$4 sm:$0xff]   ;;  %v4829_v60 = vld [vmem:[#allocation5 + $0x810] ss:$24 sps:$4 sm:$0xff]  }
  0x90   :  { %1968 = vmatprep.subr.bf16.mxu1 %v4744_v61  ;;  %v4837_v61 = vld [vmem:[#allocation5 + $0x7e4] ss:$24 sps:$4 sm:$0xff]  }
  0x92   :  { %1928 = vmatpush2.bf16.msra.mxu0 %v4743_v62  ;;  %v4832_v62 = vld [vmem:[#allocation5 + $0x218] ss:$24 sps:$4 sm:$0xff]  }
  0x93   :  { %1929 = vmatprep.subr.bf16.mxu0 %v4747_v63  ;;  %1969 = vmatpush2.bf16.msra.mxu1 %v4746_v0  ;;  %v4840_v63 = vld [vmem:[#allocation5 + $0x1ec] ss:$24 sps:$4 sm:$0xff]   ;;  %v4835_v0 = vld [vmem:[#allocation5 + $0x7e0] ss:$24 sps:$4 sm:$0xff]  }
  0x94   :  { %1970 = vmatprep.subr.bf16.mxu1 %v4750_v1  ;;  %v4843_v1 = vld [vmem:[#allocation5 + $0x7b4] ss:$24 sps:$4 sm:$0xff]  }
  0x96   :  { %1930 = vmatpush2.bf16.msra.mxu0 %v4749_v2  ;;  %v4838_v2 = vld [vmem:[#allocation5 + $0x1e8] ss:$24 sps:$4 sm:$0xff]  }
  0x97   :  { %1981 = vmatprep.subr.bf16.mxu0 %v4757_v3  ;;  %1971 = vmatpush2.bf16.msra.mxu1 %v4753_v4  ;;  %v4846_v3 = vld [vmem:[#allocation5 + $0x1bc] ss:$24 sps:$4 sm:$0xff]   ;;  %v4841_v4 = vld [vmem:[#allocation5 + $0x7b0] ss:$24 sps:$4 sm:$0xff]  }
  0x98   :  { %2022 = vmatprep.subr.bf16.mxu1 %v4762_v6  ;;  %v4849_v6 = vld [vmem:[#allocation5 + $0x784] ss:$24 sps:$4 sm:$0xff]  }
  0x99   :  { %1932 = vmatmul.mubr.bf16.vlgmr.msra.gmra.mxu0 %v5682_v5 }
  0x9a   :  { %1982 = vmatpush1.bf16.msra.mxu0 %v4755_v7  ;;  %1973 = vmatmul.mubr.bf16.vlgmr.msra.gmra.mxu1 %v5684_v8  ;;  %v4844_v7 = vld [vmem:[#allocation5 + $0x1b8] ss:$24 sps:$4 sm:$0xff]  }
  0x9b   :  { %1983 = vmatprep.subr.bf16.mxu0 %v4765_v9  ;;  %2023 = vmatpush1.bf16.msra.mxu1 %v4760_v10  ;;  %v4852_v9 = vld [vmem:[#allocation5 + $0x18c] ss:$24 sps:$4 sm:$0xff]   ;;  %v4847_v10 = vld [vmem:[#allocation5 + $0x780] ss:$24 sps:$4 sm:$0xff]  }
  0x9c   :  { %2054 = vmatprep.mubr.bf16.mxu1 %v5676_v48  ;;  %2024 = vmatprep.subr.bf16.mxu1 %v4768_v11  ;;  %v4857_v11 = vld [vmem:[#allocation5 + $0x45c] ss:$24 sps:$4 sm:$0xff]  }
  0x9d   :  { %2013 = vmatprep.mubr.bf16.mxu0 %v5693_v34 }
  0x9e   :  { %1984 = vmatpush1.bf16.msra.mxu0 %v4763_v12  ;;  %v4850_v12 = vld [vmem:[#allocation5 + $0x188] ss:$24 sps:$4 sm:$0xff]  }
  0x9f   :  { %1985 = vmatprep.subr.bf16.mxu0 %v4771_v13  ;;  %2025 = vmatpush1.bf16.msra.mxu1 %v4766_v14  ;;  %v5698_v13 = vcombine.low %v5689_v32, %v5689_v32  ;;  %v4860_v14 = vld [vmem:[#allocation5 + $0x75c] ss:$24 sps:$4 sm:$0xff]   ;;  %v4887_v32 = vld [vmem:[#allocation5 + $0x36c] ss:$24 sps:$4 sm:$0xff]  }
  0xa0   :  { %2026 = vmatprep.subr.bf16.mxu1 %v4774_v15  ;;  %v4855_v15 = vld [vmem:[#allocation5 + $0x458] ss:$24 sps:$4 sm:$0xff]  }
  0xa2   :  { %1986 = vmatpush1.bf16.msra.mxu0 %v4769_v16  ;;  %v4863_v16 = vld [vmem:[#allocation5 + $0x42c] ss:$24 sps:$4 sm:$0xff]  }
  0xa3   :  { %1987 = vmatprep.subr.bf16.mxu0 %v4777_v17  ;;  %2027 = vmatpush1.bf16.msra.mxu1 %v4772_v18  ;;  %v4858_v17 = vld [vmem:[#allocation5 + $0x758] ss:$24 sps:$4 sm:$0xff]   ;;  %v4866_v18 = vld [vmem:[#allocation5 + $0x72c] ss:$24 sps:$4 sm:$0xff]  }
  0xa4   :  { %2028 = vmatprep.subr.bf16.mxu1 %v4780_v19  ;;  %v4861_v19 = vld [vmem:[#allocation5 + $0x428] ss:$24 sps:$4 sm:$0xff]  }
  0xa6   :  { %1988 = vmatpush1.bf16.msra.mxu0 %v4775_v20  ;;  %v4869_v20 = vld [vmem:[#allocation5 + $0x3fc] ss:$24 sps:$4 sm:$0xff]  }
  0xa7   :  { %1989 = vmatprep.subr.bf16.mxu0 %v4783_v21  ;;  %2029 = vmatpush1.bf16.msra.mxu1 %v4778_v22  ;;  %v4864_v21 = vld [vmem:[#allocation5 + $0x728] ss:$24 sps:$4 sm:$0xff]   ;;  %v4872_v22 = vld [vmem:[#allocation5 + $0x6fc] ss:$24 sps:$4 sm:$0xff]  }
  0xa8   :  { %2030 = vmatprep.subr.bf16.mxu1 %v4786_v23  ;;  %v4867_v23 = vld [vmem:[#allocation5 + $0x3f8] ss:$24 sps:$4 sm:$0xff]  }
  0xaa   :  { %1990 = vmatpush1.bf16.msra.mxu0 %v4781_v24  ;;  %v4875_v24 = vld [vmem:[#allocation5 + $0x3cc] ss:$24 sps:$4 sm:$0xff]  }
  0xab   :  { %1991 = vmatprep.subr.bf16.mxu0 %v4789_v25  ;;  %2031 = vmatpush1.bf16.msra.mxu1 %v4784_v26  ;;  %v4870_v25 = vld [vmem:[#allocation5 + $0x6f8] ss:$24 sps:$4 sm:$0xff]   ;;  %v4878_v26 = vld [vmem:[#allocation5 + $0x6cc] ss:$24 sps:$4 sm:$0xff]  }
  0xac   :  { %2032 = vmatprep.subr.bf16.mxu1 %v4792_v27  ;;  %v4873_v27 = vld [vmem:[#allocation5 + $0x3c8] ss:$24 sps:$4 sm:$0xff]  }
  0xae   :  { %1992 = vmatpush1.bf16.msra.mxu0 %v4787_v28  ;;  %v4881_v28 = vld [vmem:[#allocation5 + $0x39c] ss:$24 sps:$4 sm:$0xff]  }
  0xaf   :  { %1993 = vmatprep.subr.bf16.mxu0 %v4795_v29  ;;  %2033 = vmatpush1.bf16.msra.mxu1 %v4790_v30  ;;  %v4876_v29 = vld [vmem:[#allocation5 + $0x6c8] ss:$24 sps:$4 sm:$0xff]   ;;  %v4884_v30 = vld [vmem:[#allocation5 + $0x69c] ss:$24 sps:$4 sm:$0xff]  }
  0xb0   :  { %2034 = vmatprep.subr.bf16.mxu1 %v4798_v31  ;;  %v4879_v31 = vld [vmem:[#allocation5 + $0x398] ss:$24 sps:$4 sm:$0xff]  }
  0xb2   :  { %1994 = vmatpush1.bf16.msra.mxu0 %v4793_v33  ;;  %v4882_v33 = vld [vmem:[#allocation5 + $0x698] ss:$24 sps:$4 sm:$0xff]  }
  0xb3   :  { %1995 = vmatprep.subr.bf16.mxu0 %v4801_v35  ;;  %2035 = vmatpush1.bf16.msra.mxu1 %v4796_v36  ;;  %v4890_v35 = vld [vmem:[#allocation5 + $0x66c] ss:$24 sps:$4 sm:$0xff]   ;;  %v4885_v36 = vld [vmem:[#allocation5 + $0x368] ss:$24 sps:$4 sm:$0xff]  }
  0xb4   :  { %2036 = vmatprep.subr.bf16.mxu1 %v4804_v37  ;;  %v4893_v37 = vld [vmem:[#allocation5 + $0x33c] ss:$24 sps:$4 sm:$0xff]  }
  0xb6   :  { %1996 = vmatpush1.bf16.msra.mxu0 %v4799_v38  ;;  %v4888_v38 = vld [vmem:[#allocation5 + $0x668] ss:$24 sps:$4 sm:$0xff]  }
  0xb7   :  { %1997 = vmatprep.subr.bf16.mxu0 %v4807_v39  ;;  %2037 = vmatpush1.bf16.msra.mxu1 %v4802_v40  ;;  %v4896_v39 = vld [vmem:[#allocation5 + $0x63c] ss:$24 sps:$4 sm:$0xff]   ;;  %v4891_v40 = vld [vmem:[#allocation5 + $0x338] ss:$24 sps:$4 sm:$0xff]  }
  0xb8   :  { %2038 = vmatprep.subr.bf16.mxu1 %v4810_v41  ;;  %v4899_v41 = vld [vmem:[#allocation5 + $0x30c] ss:$24 sps:$4 sm:$0xff]  }
  0xba   :  { %1998 = vmatpush2.bf16.msra.mxu0 %v4805_v42  ;;  %v4894_v42 = vld [vmem:[#allocation5 + $0x638] ss:$24 sps:$4 sm:$0xff]  }
  0xbb   :  { %1999 = vmatprep.subr.bf16.mxu0 %v4813_v43  ;;  %2039 = vmatpush2.bf16.msra.mxu1 %v4808_v44  ;;  %v4902_v43 = vld [vmem:[#allocation5 + $0x60c] ss:$24 sps:$4 sm:$0xff]   ;;  %v4897_v44 = vld [vmem:[#allocation5 + $0x308] ss:$24 sps:$4 sm:$0xff]  }
  0xbc   :  { %2040 = vmatprep.subr.bf16.mxu1 %v4816_v45  ;;  %v4905_v45 = vld [vmem:[#allocation5 + $0x5dc] ss:$24 sps:$4 sm:$0xff]  }
  0xbe   :  { %2000 = vmatpush2.bf16.msra.mxu0 %v4811_v46  ;;  %v4900_v46 = vld [vmem:[#allocation5 + $0x608] ss:$24 sps:$4 sm:$0xff]  }
  0xbf   :  { %2001 = vmatprep.subr.bf16.mxu0 %v4819_v47  ;;  %2041 = vmatpush2.bf16.msra.mxu1 %v4814_v49  ;;  %v4908_v47 = vld [vmem:[#allocation5 + $0x8dc] ss:$24 sps:$4 sm:$0xff]   ;;  %v4903_v49 = vld [vmem:[#allocation5 + $0x5d8] ss:$24 sps:$4 sm:$0xff]  }
  0xc0   :  { %2042 = vmatprep.subr.bf16.mxu1 %v4822_v50  ;;  %v4911_v50 = vld [vmem:[#allocation5 + $0x5ac] ss:$24 sps:$4 sm:$0xff]  }
  0xc2   :  { %2002 = vmatpush2.bf16.msra.mxu0 %v4817_v51  ;;  %v4906_v51 = vld [vmem:[#allocation5 + $0x8d8] ss:$24 sps:$4 sm:$0xff]  }
  0xc3   :  { %2003 = vmatprep.subr.bf16.mxu0 %v4825_v53  ;;  %2043 = vmatpush2.bf16.msra.mxu1 %v4820_v54  ;;  %v4914_v53 = vld [vmem:[#allocation5 + $0x8ac] ss:$24 sps:$4 sm:$0xff]   ;;  %v4909_v54 = vld [vmem:[#allocation5 + $0x5a8] ss:$24 sps:$4 sm:$0xff]  }
  0xc4   :  { %2044 = vmatprep.subr.bf16.mxu1 %v4828_v55  ;;  %v4917_v55 = vld [vmem:[#allocation5 + $0x57c] ss:$24 sps:$4 sm:$0xff]  }
  0xc6   :  { %2004 = vmatpush2.bf16.msra.mxu0 %v4823_v56  ;;  %v4912_v56 = vld [vmem:[#allocation5 + $0x8a8] ss:$24 sps:$4 sm:$0xff]  }
  0xc7   :  { %2005 = vmatprep.subr.bf16.mxu0 %v4831_v57  ;;  %2045 = vmatpush2.bf16.msra.mxu1 %v4826_v58  ;;  %v4920_v57 = vld [vmem:[#allocation5 + $0x87c] ss:$24 sps:$4 sm:$0xff]   ;;  %v4915_v58 = vld [vmem:[#allocation5 + $0x578] ss:$24 sps:$4 sm:$0xff]  }
  0xc8   :  { %2046 = vmatprep.subr.bf16.mxu1 %v4834_v59  ;;  %v4923_v59 = vld [vmem:[#allocation5 + $0x54c] ss:$24 sps:$4 sm:$0xff]  }
  0xca   :  { %2006 = vmatpush2.bf16.msra.mxu0 %v4829_v60  ;;  %v4918_v60 = vld [vmem:[#allocation5 + $0x878] ss:$24 sps:$4 sm:$0xff]  }
  0xcb   :  { %2007 = vmatprep.subr.bf16.mxu0 %v4837_v61  ;;  %2047 = vmatpush2.bf16.msra.mxu1 %v4832_v62  ;;  %v4926_v61 = vld [vmem:[#allocation5 + $0x84c] ss:$24 sps:$4 sm:$0xff]   ;;  %v4921_v62 = vld [vmem:[#allocation5 + $0x548] ss:$24 sps:$4 sm:$0xff]  }
  0xcc   :  { %2048 = vmatprep.subr.bf16.mxu1 %v4840_v63  ;;  %v4929_v63 = vld [vmem:[#allocation5 + $0x51c] ss:$24 sps:$4 sm:$0xff]  }
  0xce   :  { %2008 = vmatpush2.bf16.msra.mxu0 %v4835_v0  ;;  %v4924_v0 = vld [vmem:[#allocation5 + $0x848] ss:$24 sps:$4 sm:$0xff]  }
  0xcf   :  { %2009 = vmatprep.subr.bf16.mxu0 %v4843_v1  ;;  %2049 = vmatpush2.bf16.msra.mxu1 %v4838_v2  ;;  %v4932_v1 = vld [vmem:[#allocation5 + $0x81c] ss:$24 sps:$4 sm:$0xff]   ;;  %v4927_v2 = vld [vmem:[#allocation5 + $0x518] ss:$24 sps:$4 sm:$0xff]  }
  0xd0   :  { %2050 = vmatprep.subr.bf16.mxu1 %v4846_v3  ;;  %v4935_v3 = vld [vmem:[#allocation5 + $0x4ec] ss:$24 sps:$4 sm:$0xff]  }
  0xd2   :  { %2010 = vmatpush2.bf16.msra.mxu0 %v4841_v4  ;;  %v4930_v4 = vld [vmem:[#allocation5 + $0x818] ss:$24 sps:$4 sm:$0xff]  }
  0xd3   :  { %2011 = vmatprep.subr.bf16.mxu0 %v4849_v6  ;;  %2051 = vmatpush2.bf16.msra.mxu1 %v4844_v7  ;;  %v4938_v6 = vld [vmem:[#allocation5 + $0x7ec] ss:$24 sps:$4 sm:$0xff]   ;;  %v4933_v7 = vld [vmem:[#allocation5 + $0x4e8] ss:$24 sps:$4 sm:$0xff]  }
  0xd4   :  { %2052 = vmatprep.subr.bf16.mxu1 %v4852_v9  ;;  %v4941_v9 = vld [vmem:[#allocation5 + $0x4bc] ss:$24 sps:$4 sm:$0xff]  }
  0xd6   :  { %2012 = vmatpush2.bf16.msra.mxu0 %v4847_v10  ;;  %v4936_v10 = vld [vmem:[#allocation5 + $0x7e8] ss:$24 sps:$4 sm:$0xff]  }
  0xd7   :  { %2063 = vmatprep.subr.bf16.mxu0 %v4857_v11  ;;  %2053 = vmatpush2.bf16.msra.mxu1 %v4850_v12  ;;  %v4944_v11 = vld [vmem:[#allocation5 + $0x7bc] ss:$24 sps:$4 sm:$0xff]   ;;  %v4939_v12 = vld [vmem:[#allocation5 + $0x4b8] ss:$24 sps:$4 sm:$0xff]  }
  0xd8   :  { %2104 = vmatprep.subr.bf16.mxu1 %v4860_v14  ;;  %v4947_v14 = vld [vmem:[#allocation5 + $0x48c] ss:$24 sps:$4 sm:$0xff]  }
  0xd9   :  { %2014 = vmatmul.mubr.bf16.vlgmr.msra.gmra.mxu0 %v5698_v13 }
  0xda   :  { %2064 = vmatpush1.bf16.msra.mxu0 %v4855_v15  ;;  %2095 = vmatprep.mubr.bf16.mxu0 %v5679_v52  ;;  %v4942_v15 = vld [vmem:[#allocation5 + $0x7b8] ss:$24 sps:$4 sm:$0xff]  }
  0xdb   :  { %2055 = vmatmul.mubr.bf16.vlgmr.msra.gmra.mxu1 %v5682_v5  ;;  %2065 = vmatprep.subr.bf16.mxu0 %v4863_v16  ;;  %v4950_v16 = vld [vmem:[#allocation5 + $0x78c] ss:$24 sps:$4 sm:$0xff]  }
  0xdc   :  { %2105 = vmatpush1.bf16.msra.mxu1 %v4858_v17  ;;  %2136 = vmatprep.mubr.bf16.mxu1 %v5693_v34  ;;  %v4945_v17 = vld [vmem:[#allocation5 + $0x488] ss:$24 sps:$4 sm:$0xff]  }
  0xdd   :  { %2106 = vmatprep.subr.bf16.mxu1 %v4866_v18  ;;  %v4953_v18 = vld [vmem:[#allocation5 + $0x164] ss:$24 sps:$4 sm:$0xff]  }
  0xde   :  { %2066 = vmatpush1.bf16.msra.mxu0 %v4861_v19  ;;  %v4948_v19 = vld [vmem:[#allocation5 + $0x788] ss:$24 sps:$4 sm:$0xff]  }
  0xdf   :  { %2067 = vmatprep.subr.bf16.mxu0 %v4869_v20  ;;  %v4956_v20 = vld [vmem:[#allocation5 + $0x464] ss:$24 sps:$4 sm:$0xff]  }
  0xe0   :  { %2107 = vmatpush1.bf16.msra.mxu1 %v4864_v21  ;;  %v4951_v21 = vld [vmem:[#allocation5 + $0x160] ss:$24 sps:$4 sm:$0xff]  }
  0xe1   :  { %2108 = vmatprep.subr.bf16.mxu1 %v4872_v22  ;;  %v4959_v22 = vld [vmem:[#allocation5 + $0x134] ss:$24 sps:$4 sm:$0xff]  }
  0xe2   :  { %2068 = vmatpush1.bf16.msra.mxu0 %v4867_v23  ;;  %v4954_v23 = vld [vmem:[#allocation5 + $0x460] ss:$24 sps:$4 sm:$0xff]  }
  0xe3   :  { %2069 = vmatprep.subr.bf16.mxu0 %v4875_v24  ;;  %v4962_v24 = vld [vmem:[#allocation5 + $0x434] ss:$24 sps:$4 sm:$0xff]  }
  0xe4   :  { %2109 = vmatpush1.bf16.msra.mxu1 %v4870_v25  ;;  %v4957_v25 = vld [vmem:[#allocation5 + $0x130] ss:$24 sps:$4 sm:$0xff]  }
  0xe5   :  { %2110 = vmatprep.subr.bf16.mxu1 %v4878_v26  ;;  %v4965_v26 = vld [vmem:[#allocation5 + $0x104] ss:$24 sps:$4 sm:$0xff]  }
  0xe6   :  { %2070 = vmatpush1.bf16.msra.mxu0 %v4873_v27  ;;  %v4960_v27 = vld [vmem:[#allocation5 + $0x430] ss:$24 sps:$4 sm:$0xff]  }
  0xe7   :  { %2071 = vmatprep.subr.bf16.mxu0 %v4881_v28  ;;  %v4968_v28 = vld [vmem:[#allocation5 + $0x404] ss:$24 sps:$4 sm:$0xff]  }
  0xe8   :  { %2111 = vmatpush1.bf16.msra.mxu1 %v4876_v29  ;;  %v4963_v29 = vld [vmem:[#allocation5 + $0x100] ss:$24 sps:$4 sm:$0xff]  }
  0xe9   :  { %2112 = vmatprep.subr.bf16.mxu1 %v4884_v30  ;;  %v4971_v30 = vld [vmem:[#allocation5 + $0xd4] ss:$24 sps:$4 sm:$0xff]  }
  0xea   :  { %2072 = vmatpush1.bf16.msra.mxu0 %v4879_v31  ;;  %v4966_v31 = vld [vmem:[#allocation5 + $0x400] ss:$24 sps:$4 sm:$0xff]  }
  0xeb   :  { %2073 = vmatprep.subr.bf16.mxu0 %v4887_v32  ;;  %v4974_v32 = vld [vmem:[#allocation5 + $0x3d4] ss:$24 sps:$4 sm:$0xff]  }
  0xec   :  { %2113 = vmatpush1.bf16.msra.mxu1 %v4882_v33  ;;  %v4977_v33 = vld [vmem:[#allocation5 + $0xa4] ss:$24 sps:$4 sm:$0xff]  }
  0xed   :  { %2114 = vmatprep.subr.bf16.mxu1 %v4890_v35  ;;  %v4972_v35 = vld [vmem:[#allocation5 + $0x3d0] ss:$24 sps:$4 sm:$0xff]  }
  0xee   :  { %2074 = vmatpush1.bf16.msra.mxu0 %v4885_v36  ;;  %v4980_v36 = vld [vmem:[#allocation5 + $0x3a4] ss:$24 sps:$4 sm:$0xff]  }
  0xef   :  { %2075 = vmatprep.subr.bf16.mxu0 %v4893_v37  ;;  %v4983_v37 = vld [vmem:[#allocation5 + $0x74] ss:$24 sps:$4 sm:$0xff]  }
  0xf0   :  { %2115 = vmatpush1.bf16.msra.mxu1 %v4888_v38  ;;  %v4978_v38 = vld [vmem:[#allocation5 + $0x3a0] ss:$24 sps:$4 sm:$0xff]  }
  0xf1   :  { %2116 = vmatprep.subr.bf16.mxu1 %v4896_v39  ;;  %v4986_v39 = vld [vmem:[#allocation5 + $0x374] ss:$24 sps:$4 sm:$0xff]  }
  0xf2   :  { %2076 = vmatpush1.bf16.msra.mxu0 %v4891_v40  ;;  %v4981_v40 = vld [vmem:[#allocation5 + $0x70] ss:$24 sps:$4 sm:$0xff]  }
  0xf3   :  { %2077 = vmatprep.subr.bf16.mxu0 %v4899_v41  ;;  %v4989_v41 = vld [vmem:[#allocation5 + $0x44] ss:$24 sps:$4 sm:$0xff]  }
  0xf4   :  { %2117 = vmatpush1.bf16.msra.mxu1 %v4894_v42  ;;  %v4984_v42 = vld [vmem:[#allocation5 + $0x370] ss:$24 sps:$4 sm:$0xff]  }
  0xf5   :  { %2118 = vmatprep.subr.bf16.mxu1 %v4902_v43  ;;  %v4992_v43 = vld [vmem:[#allocation5 + $0x344] ss:$24 sps:$4 sm:$0xff]  }
  0xf6   :  { %2078 = vmatpush1.bf16.msra.mxu0 %v4897_v44  ;;  %v4987_v44 = vld [vmem:[#allocation5 + $0x40] ss:$24 sps:$4 sm:$0xff]  }
  0xf7   :  { %2079 = vmatprep.subr.bf16.mxu0 %v4905_v45  ;;  %v4995_v45 = vld [vmem:[#allocation5 + $0x14] ss:$24 sps:$4 sm:$0xff]  }
  0xf8   :  { %2119 = vmatpush1.bf16.msra.mxu1 %v4900_v46  ;;  %v4990_v46 = vld [vmem:[#allocation5 + $0x340] ss:$24 sps:$4 sm:$0xff]  }
  0xf9   :  { %2120 = vmatprep.subr.bf16.mxu1 %v4908_v47  ;;  %v4998_v47 = vld [vmem:[#allocation5 + $0x314] ss:$24 sps:$4 sm:$0xff]  }
  0xfa   :  { %2080 = vmatpush2.bf16.msra.mxu0 %v4903_v49  ;;  %v4993_v49 = vld [vmem:[#allocation5 + $0x10] ss:$24 sps:$4 sm:$0xff]  }
  0xfb   :  { %2081 = vmatprep.subr.bf16.mxu0 %v4911_v50  ;;  %v5001_v50 = vld [vmem:[#allocation5 + $0x2e4] ss:$24 sps:$4 sm:$0xff]  }
  0xfc   :  { %2121 = vmatpush2.bf16.msra.mxu1 %v4906_v51  ;;  %v4996_v51 = vld [vmem:[#allocation5 + $0x310] ss:$24 sps:$4 sm:$0xff]  }
  0xfd   :  { %2122 = vmatprep.subr.bf16.mxu1 %v4914_v53  ;;  %v5004_v53 = vld [vmem:[#allocation5 + $0x5e4] ss:$24 sps:$4 sm:$0xff]  }
  0xfe   :  { %2082 = vmatpush2.bf16.msra.mxu0 %v4909_v54  ;;  %v4999_v54 = vld [vmem:[#allocation5 + $0x2e0] ss:$24 sps:$4 sm:$0xff]  }
  0xff   :  { %2083 = vmatprep.subr.bf16.mxu0 %v4917_v55  ;;  %v5007_v55 = vld [vmem:[#allocation5 + $0x2b4] ss:$24 sps:$4 sm:$0xff]  }
 0x100   :  { %2123 = vmatpush2.bf16.msra.mxu1 %v4912_v56  ;;  %v5002_v56 = vld [vmem:[#allocation5 + $0x5e0] ss:$24 sps:$4 sm:$0xff]  }
 0x101   :  { %2124 = vmatprep.subr.bf16.mxu1 %v4920_v57  ;;  %v5005_v57 = vld [vmem:[#allocation5 + $0x2b0] ss:$24 sps:$4 sm:$0xff]  }
 0x102   :  { %2084 = vmatpush2.bf16.msra.mxu0 %v4915_v58  ;;  %v5010_v58 = vld [vmem:[#allocation5 + $0x5b4] ss:$24 sps:$4 sm:$0xff]  }
 0x103   :  { %2085 = vmatprep.subr.bf16.mxu0 %v4923_v59  ;;  %v5008_v59 = vld [vmem:[#allocation5 + $0x5b0] ss:$24 sps:$4 sm:$0xff]  }
 0x104   :  { %2125 = vmatpush2.bf16.msra.mxu1 %v4918_v60  ;;  %v5013_v60 = vld [vmem:[#allocation5 + $0x284] ss:$24 sps:$4 sm:$0xff]  }
 0x105   :  { %2126 = vmatprep.subr.bf16.mxu1 %v4926_v61  ;;  %v5016_v61 = vld [vmem:[#allocation5 + $0x584] ss:$24 sps:$4 sm:$0xff]  }
 0x106   :  { %2086 = vmatpush2.bf16.msra.mxu0 %v4921_v62  ;;  %v5011_v62 = vld [vmem:[#allocation5 + $0x280] ss:$24 sps:$4 sm:$0xff]  }
 0x107   :  { %2087 = vmatprep.subr.bf16.mxu0 %v4929_v63  ;;  %v5014_v63 = vld [vmem:[#allocation5 + $0x580] ss:$24 sps:$4 sm:$0xff]  }
 0x108   :  { %2127 = vmatpush2.bf16.msra.mxu1 %v4924_v0  ;;  %v5019_v0 = vld [vmem:[#allocation5 + $0x254] ss:$24 sps:$4 sm:$0xff]  }
 0x109   :  { %2128 = vmatprep.subr.bf16.mxu1 %v4932_v1  ;;  %v5022_v1 = vld [vmem:[#allocation5 + $0x554] ss:$24 sps:$4 sm:$0xff]  }
 0x10a   :  { %2088 = vmatpush2.bf16.msra.mxu0 %v4927_v2  ;;  %v5017_v2 = vld [vmem:[#allocation5 + $0x250] ss:$24 sps:$4 sm:$0xff]  }
 0x10b   :  { %2089 = vmatprep.subr.bf16.mxu0 %v4935_v3  ;;  %v5025_v3 = vld [vmem:[#allocation5 + $0x224] ss:$24 sps:$4 sm:$0xff]  }
 0x10c   :  { %2129 = vmatpush2.bf16.msra.mxu1 %v4930_v4  ;;  %v5020_v4 = vld [vmem:[#allocation5 + $0x550] ss:$24 sps:$4 sm:$0xff]  }
 0x10d   :  { %2130 = vmatprep.subr.bf16.mxu1 %v4938_v6  ;;  %v5028_v6 = vld [vmem:[#allocation5 + $0x524] ss:$24 sps:$4 sm:$0xff]  }
 0x10e   :  { %2090 = vmatpush2.bf16.msra.mxu0 %v4933_v7  ;;  %v5023_v7 = vld [vmem:[#allocation5 + $0x220] ss:$24 sps:$4 sm:$0xff]  }
 0x10f   :  { %2091 = vmatprep.subr.bf16.mxu0 %v4941_v9  ;;  %v5031_v9 = vld [vmem:[#allocation5 + $0x1f4] ss:$24 sps:$4 sm:$0xff]  }
 0x110   :  { %2131 = vmatpush2.bf16.msra.mxu1 %v4936_v10  ;;  %v5026_v10 = vld [vmem:[#allocation5 + $0x520] ss:$24 sps:$4 sm:$0xff]  }
 0x111   :  { %2132 = vmatprep.subr.bf16.mxu1 %v4944_v11  ;;  %v5034_v11 = vld [vmem:[#allocation5 + $0x4f4] ss:$24 sps:$4 sm:$0xff]  }
 0x112   :  { %2092 = vmatpush2.bf16.msra.mxu0 %v4939_v12  ;;  %v5029_v12 = vld [vmem:[#allocation5 + $0x1f0] ss:$24 sps:$4 sm:$0xff]  }
 0x113   :  { %2093 = vmatprep.subr.bf16.mxu0 %v4947_v14  ;;  %v5037_v14 = vld [vmem:[#allocation5 + $0x1c4] ss:$24 sps:$4 sm:$0xff]  }
 0x114   :  { %2133 = vmatpush2.bf16.msra.mxu1 %v4942_v15  ;;  %v5032_v15 = vld [vmem:[#allocation5 + $0x4f0] ss:$24 sps:$4 sm:$0xff]  }
 0x115   :  { %2134 = vmatprep.subr.bf16.mxu1 %v4950_v16  ;;  %v5040_v16 = vld [vmem:[#allocation5 + $0x4c4] ss:$24 sps:$4 sm:$0xff]  }
 0x116   :  { %2094 = vmatpush2.bf16.msra.mxu0 %v4945_v17  ;;  %v5035_v17 = vld [vmem:[#allocation5 + $0x1c0] ss:$24 sps:$4 sm:$0xff]  }
 0x117   :  { %2145 = vmatprep.subr.bf16.mxu0 %v4953_v18  ;;  %v5043_v18 = vld [vmem:[#allocation5 + $0x194] ss:$24 sps:$4 sm:$0xff]  }
 0x118   :  { %2135 = vmatpush2.bf16.msra.mxu1 %v4948_v19  ;;  %v5038_v19 = vld [vmem:[#allocation5 + $0x4c0] ss:$24 sps:$4 sm:$0xff]  }
 0x119   :  { %2096 = vmatmul.mubr.bf16.vlgmr.msra.gmra.mxu0 %v5684_v8  ;;  %2186 = vmatprep.subr.bf16.mxu1 %v4956_v20  ;;  %v5046_v20 = vld [vmem:[#allocation5 + $0x494] ss:$24 sps:$4 sm:$0xff]  }
 0x11a   :  { %2146 = vmatpush1.bf16.msra.mxu0 %v4951_v21  ;;  %2177 = vmatprep.mubr.bf16.mxu0 %v5676_v48  ;;  %v4969_v48 = vld [vmem:[#allocation5 + $0xd0] ss:$24 sps:$4 sm:$0xff]  }
 0x11b   :  { %2137 = vmatmul.mubr.bf16.vlgmr.msra.gmra.mxu1 %v5698_v13  ;;  %2147 = vmatprep.subr.bf16.mxu0 %v4959_v22  ;;  %v5041_v21 = vld [vmem:[#allocation5 + $0x190] ss:$24 sps:$4 sm:$0xff]   ;;  %v5049_v22 = vld [vmem:[#allocation5 + $0x764] ss:$24 sps:$4 sm:$0xff]  }
 0x11c   :  { %2187 = vmatpush1.bf16.msra.mxu1 %v4954_v23  ;;  %2218 = vmatprep.mubr.bf16.mxu1 %v5679_v52  ;;  %v4975_v52 = vld [vmem:[#allocation5 + $0xa0] ss:$24 sps:$4 sm:$0xff]   ;;  %v5044_v23 = vld [vmem:[#allocation5 + $0x490] ss:$24 sps:$4 sm:$0xff]  }
 0x11d   :  { %2188 = vmatprep.subr.bf16.mxu1 %v4962_v24  ;;  %v5067_v24 = vld [vmem:[#allocation8 + $0xe4] ss:$16 sps:$4 sm:$0xff]  }
 0x11e   :  { %2148 = vmatpush1.bf16.msra.mxu0 %v4957_v25  ;;  %v5047_v25 = vld [vmem:[#allocation5 + $0x760] ss:$24 sps:$4 sm:$0xff]  }
 0x11f   :  { %2149 = vmatprep.subr.bf16.mxu0 %v4965_v26  ;;  %v5052_v26 = vld [vmem:[#allocation5 + $0x734] ss:$24 sps:$4 sm:$0xff]  }
 0x120   :  { %2189 = vmatpush1.bf16.msra.mxu1 %v4960_v27  ;;  %v5065_v27 = vld [vmem:[#allocation8 + $0xe0] ss:$16 sps:$4 sm:$0xff]  }
 0x121   :  { %2190 = vmatprep.subr.bf16.mxu1 %v4968_v28  ;;  %v5073_v28 = vld [vmem:[#allocation8 + $0xc4] ss:$16 sps:$4 sm:$0xff]  }
 0x122   :  { %2150 = vmatpush1.bf16.msra.mxu0 %v4963_v29  ;;  %v5050_v29 = vld [vmem:[#allocation5 + $0x730] ss:$24 sps:$4 sm:$0xff]  }
 0x123   :  { %2151 = vmatprep.subr.bf16.mxu0 %v4971_v30 }
 0x124   :  { %2191 = vmatpush1.bf16.msra.mxu1 %v4966_v31  ;;  %v5055_v31 = vld [vmem:[#allocation5 + $0x704] ss:$24 sps:$4 sm:$0xff]  }
 0x125   :  { %2192 = vmatprep.subr.bf16.mxu1 %v4974_v32  ;;  %v5071_v32 = vld [vmem:[#allocation8 + $0xc0] ss:$16 sps:$4 sm:$0xff]  }
 0x126   :  { %2152 = vmatpush1.bf16.msra.mxu0 %v4969_v48 }
 0x127   :  { %2153 = vmatprep.subr.bf16.mxu0 %v4977_v33 }
 0x128   :  { %2193 = vmatpush1.bf16.msra.mxu1 %v4972_v35  ;;  %v5079_v35 = vld [vmem:[#allocation8 + $0xa4] ss:$16 sps:$4 sm:$0xff]  }
 0x129   :  { %2194 = vmatprep.subr.bf16.mxu1 %v4980_v36  ;;  %v5053_v36 = vld [vmem:[#allocation5 + $0x700] ss:$24 sps:$4 sm:$0xff]  }
 0x12a   :  { %2154 = vmatpush1.bf16.msra.mxu0 %v4975_v52 }
 0x12b   :  { %2155 = vmatprep.subr.bf16.mxu0 %v4983_v37 }
 0x12c   :  { %2195 = vmatpush1.bf16.msra.mxu1 %v4978_v38  ;;  %v5077_v38 = vld [vmem:[#allocation8 + $0xa0] ss:$16 sps:$4 sm:$0xff]  }
 0x12d   :  { %2196 = vmatprep.subr.bf16.mxu1 %v4986_v39 }
 0x12e   :  { %2156 = vmatpush1.bf16.msra.mxu0 %v4981_v40 }
 0x12f   :  { %2157 = vmatprep.subr.bf16.mxu0 %v4989_v41  ;;  %v5056_v41 = vld [vmem:[#allocation5 + $0x6d0] ss:$24 sps:$4 sm:$0xff]  }
 0x130   :  { %2197 = vmatpush1.bf16.msra.mxu1 %v4984_v42  ;;  %v5061_v42 = vld [vmem:[#allocation5 + $0x6a4] ss:$24 sps:$4 sm:$0xff]  }
 0x131   :  { %2198 = vmatprep.subr.bf16.mxu1 %v4992_v43  ;;  %v5083_v43 = vld [vmem:[#allocation8 + $0x80] ss:$16 sps:$4 sm:$0xff]  }
 0x132   :  { %2158 = vmatpush1.bf16.msra.mxu0 %v4987_v44  ;;  %v5091_v44 = vld [vmem:[#allocation8 + $0x64] ss:$16 sps:$4 sm:$0xff]  }
 0x133   :  { %2159 = vmatprep.subr.bf16.mxu0 %v4995_v45  ;;  %v5059_v45 = vld [vmem:[#allocation5 + $0x6a0] ss:$24 sps:$4 sm:$0xff]  }
 0x134   :  { %2199 = vmatpush1.bf16.msra.mxu1 %v4990_v46  ;;  %v5064_v46 = vld [vmem:[#allocation5 + $0x674] ss:$24 sps:$4 sm:$0xff]  }
 0x135   :  { %2200 = vmatprep.subr.bf16.mxu1 %v4998_v47  ;;  %v5089_v47 = vld [vmem:[#allocation8 + $0x60] ss:$16 sps:$4 sm:$0xff]  }
 0x136   :  { %2160 = vmatpush1.bf16.msra.mxu0 %v4993_v49  ;;  %v5097_v49 = vld [vmem:[#allocation8 + $0x44] ss:$16 sps:$4 sm:$0xff]  }
 0x137   :  { %2161 = vmatprep.subr.bf16.mxu0 %v5001_v50  ;;  %v5062_v50 = vld [vmem:[#allocation5 + $0x670] ss:$24 sps:$4 sm:$0xff]  }
 0x138   :  { %2201 = vmatpush1.bf16.msra.mxu1 %v4996_v51  ;;  %v5070_v51 = vld [vmem:[#allocation5 + $0x644] ss:$24 sps:$4 sm:$0xff]  }
 0x139   :  { %2202 = vmatprep.subr.bf16.mxu1 %v5004_v53  ;;  %v5095_v53 = vld [vmem:[#allocation8 + $0x40] ss:$16 sps:$4 sm:$0xff]  }
 0x13a   :  { %2162 = vmatpush2.bf16.msra.mxu0 %v4999_v54  ;;  %v5103_v54 = vld [vmem:[#allocation8 + $0x24] ss:$16 sps:$4 sm:$0xff]  }
 0x13b   :  { %2163 = vmatprep.subr.bf16.mxu0 %v5007_v55  ;;  %v5068_v55 = vld [vmem:[#allocation5 + $0x640] ss:$24 sps:$4 sm:$0xff]  }
 0x13c   :  { %2203 = vmatpush2.bf16.msra.mxu1 %v5002_v56  ;;  %v5076_v56 = vld [vmem:[#allocation5 + $0x614] ss:$24 sps:$4 sm:$0xff]  }
 0x13d   :  { %2204 = vmatprep.subr.bf16.mxu1 %v5010_v58  ;;  %v5109_v58 = vld [vmem:[#allocation8 + $0x4] ss:$16 sps:$4 sm:$0xff]  }
 0x13e   :  { %2164 = vmatpush2.bf16.msra.mxu0 %v5005_v57  ;;  %v5101_v57 = vld [vmem:[#allocation8 + $0x20] ss:$16 sps:$4 sm:$0xff]  }
 0x13f   :  { %2165 = vmatprep.subr.bf16.mxu0 %v5013_v60  ;;  %v5082_v60 = vld [vmem:[#allocation5 + $0x8e4] ss:$24 sps:$4 sm:$0xff]  }
 0x140   :  { %2205 = vmatpush2.bf16.msra.mxu1 %v5008_v59  ;;  %v5074_v59 = vld [vmem:[#allocation5 + $0x610] ss:$24 sps:$4 sm:$0xff]  }
 0x141   :  { %2206 = vmatprep.subr.bf16.mxu1 %v5016_v61  ;;  %v5107_v61 = vld [vmem:[#allocation8] ss:$16 sps:$4 sm:$0xff]  }
 0x142   :  { %2166 = vmatpush2.bf16.msra.mxu0 %v5011_v62  ;;  %v5115_v62 = vld [vmem:[#allocation8 + $0x1e4] ss:$16 sps:$4 sm:$0xff]  }
 0x143   :  { %2167 = vmatprep.subr.bf16.mxu0 %v5019_v0  ;;  %v5088_v0 = vld [vmem:[#allocation5 + $0x8b4] ss:$24 sps:$4 sm:$0xff]  }
 0x144   :  { %2207 = vmatpush2.bf16.msra.mxu1 %v5014_v63  ;;  %v5080_v63 = vld [vmem:[#allocation5 + $0x8e0] ss:$24 sps:$4 sm:$0xff]  }
 0x145   :  { %2208 = vmatprep.subr.bf16.mxu1 %v5022_v1  ;;  %v5113_v1 = vld [vmem:[#allocation8 + $0x1e0] ss:$16 sps:$4 sm:$0xff]  }
 0x146   :  { %2168 = vmatpush2.bf16.msra.mxu0 %v5017_v2  ;;  %v5121_v2 = vld [vmem:[#allocation8 + $0x1c4] ss:$16 sps:$4 sm:$0xff]  }
 0x147   :  { %2169 = vmatprep.subr.bf16.mxu0 %v5025_v3  ;;  %v5086_v3 = vld [vmem:[#allocation5 + $0x8b0] ss:$24 sps:$4 sm:$0xff]  }
 0x148   :  { %2209 = vmatpush2.bf16.msra.mxu1 %v5020_v4  ;;  %v5094_v4 = vld [vmem:[#allocation5 + $0x884] ss:$24 sps:$4 sm:$0xff]  }
 0x149   :  { %2210 = vmatprep.subr.bf16.mxu1 %v5028_v6  ;;  %v5119_v6 = vld [vmem:[#allocation8 + $0x1c0] ss:$16 sps:$4 sm:$0xff]  }
 0x14a   :  { %2170 = vmatpush2.bf16.msra.mxu0 %v5023_v7  ;;  %v5127_v7 = vld [vmem:[#allocation8 + $0x1a4] ss:$16 sps:$4 sm:$0xff]  }
 0x14b   :  { %2171 = vmatprep.subr.bf16.mxu0 %v5031_v9  ;;  %v5092_v9 = vld [vmem:[#allocation5 + $0x880] ss:$24 sps:$4 sm:$0xff]  }
 0x14c   :  { %2211 = vmatpush2.bf16.msra.mxu1 %v5026_v10  ;;  %v5100_v10 = vld [vmem:[#allocation5 + $0x854] ss:$24 sps:$4 sm:$0xff]  }
 0x14d   :  { %2212 = vmatprep.subr.bf16.mxu1 %v5034_v11  ;;  %v5125_v11 = vld [vmem:[#allocation8 + $0x1a0] ss:$16 sps:$4 sm:$0xff]  }
 0x14e   :  { %2172 = vmatpush2.bf16.msra.mxu0 %v5029_v12  ;;  %v5130_v12 = vld [vmem:[#allocation8 + $0x184] ss:$16 sps:$4 sm:$0xff]  }
 0x14f   :  { %2173 = vmatprep.subr.bf16.mxu0 %v5037_v14  ;;  %v5098_v14 = vld [vmem:[#allocation5 + $0x850] ss:$24 sps:$4 sm:$0xff]  }
 0x150   :  { %2213 = vmatpush2.bf16.msra.mxu1 %v5032_v15  ;;  %v5106_v15 = vld [vmem:[#allocation5 + $0x824] ss:$24 sps:$4 sm:$0xff]  }
 0x151   :  { %2214 = vmatprep.subr.bf16.mxu1 %v5040_v16  ;;  %v5128_v16 = vld [vmem:[#allocation8 + $0x180] ss:$16 sps:$4 sm:$0xff]  }
 0x152   :  { %2174 = vmatpush2.bf16.msra.mxu0 %v5035_v17  ;;  %v5133_v17 = vld [vmem:[#allocation8 + $0x164] ss:$16 sps:$4 sm:$0xff]  }
 0x153   :  { %2175 = vmatprep.subr.bf16.mxu0 %v5043_v18  ;;  %v408_v18 = vlaneseq }
 0x154   :  { %2215 = vmatpush2.bf16.msra.mxu1 %v5038_v19  ;;  %v5104_v19 = vld [vmem:[#allocation5 + $0x820] ss:$24 sps:$4 sm:$0xff]  }
 0x155   :  { %2216 = vmatprep.subr.bf16.mxu1 %v5046_v20  ;;  %v5112_v20 = vld [vmem:[#allocation5 + $0x7f4] ss:$24 sps:$4 sm:$0xff]  }
 0x156   :  { %2176 = vmatpush2.bf16.msra.mxu0 %v5041_v21  ;;  %v5719_v21 = vshrl.u32 %v408_v18, 7  ;;  %v5259_v18 = vld [vmem:[#allocation8 + $0x484] ss:$16 sps:$4 sm:$0xff]  }
 0x157   :  { %2227 = vmatprep.subr.bf16.mxu0 %v5049_v22  ;;  %v5131_v22 = vld [vmem:[#allocation8 + $0x160] ss:$16 sps:$4 sm:$0xff]  }
 0x158   :  { %2217 = vmatpush2.bf16.msra.mxu1 %v5044_v23  ;;  %v5136_v23 = vld [vmem:[#allocation8 + $0x144] ss:$16 sps:$4 sm:$0xff]  }
 0x159   :  { %v5708_v30 = vpop.f32.mrf.mxu0  ;;  %2178 = vmatmul.mubr.bf16.vlgmr.msra.gmra.mxu0 %v5682_v5  ;;  %3454 = vmatprep.subr.bf16.mxu1 %v5067_v24  ;;  %v5058_v5 = vld [vmem:[#allocation5 + $0x6d4] ss:$24 sps:$4 sm:$0xff]   ;;  %v5110_v24 = vld [vmem:[#allocation5 + $0x7f0] ss:$24 sps:$4 sm:$0xff]  }
 0x15a   :  { %2228 = vmatpush1.bf16.msra.mxu0 %v5047_v25  ;;  %2259 = vmatprep.mubr.bf16.mxu0 %v5693_v34  ;;  %v5714_v33 = vpop.f32.mrf.mxu1  ;;  %v5085_v34 = vld [vmem:[#allocation8 + $0x84] ss:$16 sps:$4 sm:$0xff]  }
 0x15b   :  { %v5712_v48 = vpop.f32.mrf.mxu0  ;;  %2219 = vmatmul.mubr.bf16.vlgmr.msra.gmra.mxu1 %v5684_v8  ;;  %2229 = vmatprep.subr.bf16.mxu0 %v5052_v26  ;;  %v5118_v25 = vld [vmem:[#allocation5 + $0x7c4] ss:$24 sps:$4 sm:$0xff]   ;;  %v410_v26 = vsub.s32 0, %v5719_v21 }
 0x15c   :  { %3455 = vmatpush1.bf16.msra.mxu1 %v5065_v27  ;;  %v5717_v37 = vpop.f32.mrf.mxu1  ;;  %v5134_v27 = vld [vmem:[#allocation8 + $0x140] ss:$16 sps:$4 sm:$0xff]  }
 0x15d   :  { %v1937_v52 = vpop.f32.mrf.mxu0  ;;  %3456 = vmatprep.subr.bf16.mxu1 %v5073_v28  ;;  %v5722_v28 = vld [vmem:[#allocation7] sm:$0x3f] }
 0x15e   :  { %2230 = vmatpush1.bf16.msra.mxu0 %v5050_v29  ;;  %v1978_v40 = vpop.f32.mrf.mxu1  ;;  %v5139_v29 = vld [vmem:[#allocation8 + $0x124] ss:$16 sps:$4 sm:$0xff]   ;;  %v5137_v52 = vld [vmem:[#allocation8 + $0x120] ss:$16 sps:$4 sm:$0xff]  }
 0x15f   :  { %v1938_v39 = vpop.f32.mrf.mxu0  ;;  %2231 = vmatprep.subr.bf16.mxu0 %v5055_v31  ;;  %v414_v31 = vsub.s32 1, %v5719_v21 }
 0x160   :  { %3457 = vmatpush1.bf16.msra.mxu1 %v5071_v32  ;;  %v1979_v8 = vpop.f32.mrf.mxu1  ;;  %v5116_v32 = vld [vmem:[#allocation5 + $0x7c0] ss:$24 sps:$4 sm:$0xff]   ;;  %v5122_v39 = vld [vmem:[#allocation5 + $0x790] ss:$24 sps:$4 sm:$0xff]  }
 0x161   :  { %3458 = vmatprep.subr.bf16.mxu1 %v5079_v35  ;;  %v5124_v35 = vld [vmem:[#allocation5 + $0x794] ss:$24 sps:$4 sm:$0xff]  }
 0x162   :  { %2232 = vmatpush1.bf16.msra.mxu0 %v5053_v36  ;;  %v411_v36 = vrot.slane %v5722_v28, %v410_v26  ;;  %v5143_v8 = vld [vmem:[#allocation8 + $0x2e0] ss:$16 sps:$4 sm:$0xff]  }
 0x163   :  { %2233 = vmatprep.subr.bf16.mxu0 %v5058_v5  ;;  %v5142_v5 = vld [vmem:[#allocation8 + $0x104] ss:$16 sps:$4 sm:$0xff]  }
 0x164   :  { %3459 = vmatpush1.bf16.msra.mxu1 %v5077_v38  ;;  %v415_v38 = vrot.slane %v5722_v28, %v414_v31  ;;  %v1934_v40 = vadd.f32 %v5708_v30, %v411_v36  ;;  %v5146_v30 = vld [vmem:[#allocation8 + $0x2c0] ss:$16 sps:$4 sm:$0xff]   ;;  %v5181_v36 = vld [vmem:[#allocation8 + $0x364] ss:$16 sps:$4 sm:$0xff]  }
 0x165   :  { %3460 = vmatprep.subr.bf16.mxu1 %v5085_v34  ;;  %v5145_v34 = vld [vmem:[#allocation8 + $0x2e4] ss:$16 sps:$4 sm:$0xff]  }
 0x166   :  { %2234 = vmatpush1.bf16.msra.mxu0 %v5056_v41  ;;  %v5140_v41 = vld [vmem:[#allocation8 + $0x100] ss:$16 sps:$4 sm:$0xff]  }
 0x167   :  { %2235 = vmatprep.subr.bf16.mxu0 %v5061_v42  ;;  %v1936_v42 = vadd.f32 %v5712_v48, %v415_v38  ;;  %v5275_v38 = vld [vmem:[#allocation8 + $0x420] ss:$16 sps:$4 sm:$0xff]  }
 0x168   :  { %3461 = vmatpush1.bf16.msra.mxu1 %v5083_v43  ;;  %v5148_v43 = vld [vmem:[#allocation8 + $0x2c4] ss:$16 sps:$4 sm:$0xff]  }
 0x169   :  { %3462 = vmatprep.subr.bf16.mxu1 %v5091_v44  ;;  %v1975_v44 = vadd.f32 %v5714_v33, %v1934_v40  ;;  %v5149_v33 = vld [vmem:[#allocation8 + $0x2a0] ss:$16 sps:$4 sm:$0xff]  }
 0x16a   :  { %2236 = vmatpush1.bf16.msra.mxu0 %v5059_v45  ;;  %v5182_v40 = vld [vmem:[#allocation8 + $0x340] ss:$16 sps:$4 sm:$0xff]  }
 0x16b   :  { %2237 = vmatprep.subr.bf16.mxu0 %v5064_v46  ;;  %v1977_v46 = vadd.f32 %v5717_v37, %v1936_v42  ;;  %v5187_v42 = vld [vmem:[#allocation8 + $0x324] ss:$16 sps:$4 sm:$0xff]  }
 0x16c   :  { %3463 = vmatpush1.bf16.msra.mxu1 %v5089_v47 }
 0x16d   :  { %3464 = vmatprep.subr.bf16.mxu1 %v5097_v49 }
 0x16e   :  { %2238 = vmatpush1.bf16.msra.mxu0 %v5062_v50  ;;  %v5151_v50 = vld [vmem:[#allocation8 + $0x2a4] ss:$16 sps:$4 sm:$0xff]  }
 0x16f   :  { %2239 = vmatprep.subr.bf16.mxu0 %v5070_v51 }
 0x170   :  { %3465 = vmatpush1.bf16.msra.mxu1 %v5095_v53 }
 0x171   :  { %3466 = vmatprep.subr.bf16.mxu1 %v5103_v54 }
 0x172   :  { %2240 = vmatpush1.bf16.msra.mxu0 %v5068_v55 }
 0x173   :  { %2241 = vmatprep.subr.bf16.mxu0 %v5076_v56 }
 0x174   :  { %3467 = vmatpush1.bf16.msra.mxu1 %v5101_v57  ;;  %v5152_v57 = vld [vmem:[#allocation8 + $0x280] ss:$16 sps:$4 sm:$0xff]  }
 0x175   :  { %3468 = vmatprep.subr.bf16.mxu1 %v5109_v58  ;;  %v5157_v58 = vld [vmem:[#allocation8 + $0x264] ss:$16 sps:$4 sm:$0xff]  }
 0x176   :  { %2242 = vmatpush1.bf16.msra.mxu0 %v5074_v59  ;;  %v5155_v59 = vld [vmem:[#allocation8 + $0x260] ss:$16 sps:$4 sm:$0xff]  }
 0x177   :  { %2243 = vmatprep.subr.bf16.mxu0 %v5082_v60  ;;  %v5160_v60 = vld [vmem:[#allocation8 + $0x244] ss:$16 sps:$4 sm:$0xff]  }
 0x178   :  { %3469 = vmatpush1.bf16.msra.mxu1 %v5107_v61 }
 0x179   :  { %3470 = vmatprep.subr.bf16.mxu1 %v5115_v62  ;;  %v5158_v62 = vld [vmem:[#allocation8 + $0x240] ss:$16 sps:$4 sm:$0xff]  }
 0x17a   :  { %2244 = vmatpush2.bf16.msra.mxu0 %v5080_v63 }
 0x17b   :  { %2245 = vmatprep.subr.bf16.mxu0 %v5088_v0  ;;  %v5163_v0 = vld [vmem:[#allocation8 + $0x224] ss:$16 sps:$4 sm:$0xff]  }
 0x17c   :  { %3471 = vmatpush2.bf16.msra.mxu1 %v5113_v1 }
 0x17d   :  { %3472 = vmatprep.subr.bf16.mxu1 %v5121_v2 }
 0x17e   :  { %2246 = vmatpush2.bf16.msra.mxu0 %v5086_v3  ;;  %v5241_v3 = vld [vmem:[#allocation8 + $0x4e4] ss:$16 sps:$4 sm:$0xff]  }
 0x17f   :  { %2247 = vmatprep.subr.bf16.mxu0 %v5094_v4  ;;  %v5161_v4 = vld [vmem:[#allocation8 + $0x220] ss:$16 sps:$4 sm:$0xff]  }
 0x180   :  { %3473 = vmatpush2.bf16.msra.mxu1 %v5119_v6  ;;  %v5239_v6 = vld [vmem:[#allocation8 + $0x4e0] ss:$16 sps:$4 sm:$0xff]  }
 0x181   :  { %3474 = vmatprep.subr.bf16.mxu1 %v5127_v7  ;;  %v5166_v7 = vld [vmem:[#allocation8 + $0x204] ss:$16 sps:$4 sm:$0xff]  }
 0x182   :  { %2248 = vmatpush2.bf16.msra.mxu0 %v5092_v9  ;;  %v5247_v9 = vld [vmem:[#allocation8 + $0x4c4] ss:$16 sps:$4 sm:$0xff]  }
 0x183   :  { %2249 = vmatprep.subr.bf16.mxu0 %v5100_v10  ;;  %v5164_v10 = vld [vmem:[#allocation8 + $0x200] ss:$16 sps:$4 sm:$0xff]  }
 0x184   :  { %3475 = vmatpush2.bf16.msra.mxu1 %v5125_v11  ;;  %v5245_v11 = vld [vmem:[#allocation8 + $0x4c0] ss:$16 sps:$4 sm:$0xff]  }
 0x185   :  { %3476 = vmatprep.subr.bf16.mxu1 %v5130_v12  ;;  %v5169_v12 = vld [vmem:[#allocation8 + $0x3e4] ss:$16 sps:$4 sm:$0xff]  }
 0x186   :  { %2250 = vmatpush2.bf16.msra.mxu0 %v5098_v14  ;;  %v5253_v14 = vld [vmem:[#allocation8 + $0x4a4] ss:$16 sps:$4 sm:$0xff]  }
 0x187   :  { %2251 = vmatprep.subr.bf16.mxu0 %v5106_v15  ;;  %v5167_v15 = vld [vmem:[#allocation8 + $0x3e0] ss:$16 sps:$4 sm:$0xff]  }
 0x188   :  { %3477 = vmatpush2.bf16.msra.mxu1 %v5128_v16  ;;  %v5251_v16 = vld [vmem:[#allocation8 + $0x4a0] ss:$16 sps:$4 sm:$0xff]  }
 0x189   :  { %3478 = vmatprep.subr.bf16.mxu1 %v5133_v17  ;;  %v5172_v17 = vld [vmem:[#allocation8 + $0x3c4] ss:$16 sps:$4 sm:$0xff]  }
 0x18a   :  { %2252 = vmatpush2.bf16.msra.mxu0 %v5104_v19  ;;  %v5170_v19 = vld [vmem:[#allocation8 + $0x3c0] ss:$16 sps:$4 sm:$0xff]  }
 0x18b   :  { %2253 = vmatprep.subr.bf16.mxu0 %v5112_v20  ;;  %v5257_v20 = vld [vmem:[#allocation8 + $0x480] ss:$16 sps:$4 sm:$0xff]  }
 0x18c   :  { %3479 = vmatpush2.bf16.msra.mxu1 %v5131_v22  ;;  %v5175_v22 = vld [vmem:[#allocation8 + $0x3a4] ss:$16 sps:$4 sm:$0xff]  }
 0x18d   :  { %3480 = vmatprep.subr.bf16.mxu1 %v5136_v23  ;;  %v5265_v23 = vld [vmem:[#allocation8 + $0x464] ss:$16 sps:$4 sm:$0xff]  }
 0x18e   :  { %2254 = vmatpush2.bf16.msra.mxu0 %v5110_v24  ;;  %v5173_v24 = vld [vmem:[#allocation8 + $0x3a0] ss:$16 sps:$4 sm:$0xff]  }
 0x18f   :  { %2255 = vmatprep.subr.bf16.mxu0 %v5118_v25  ;;  %v5263_v25 = vld [vmem:[#allocation8 + $0x460] ss:$16 sps:$4 sm:$0xff]  }
 0x190   :  { %3481 = vmatpush2.bf16.msra.mxu1 %v5134_v27  ;;  %v5178_v27 = vld [vmem:[#allocation8 + $0x384] ss:$16 sps:$4 sm:$0xff]  }
 0x191   :  { %3482 = vmatprep.subr.bf16.mxu1 %v5139_v29  ;;  %v5271_v29 = vld [vmem:[#allocation8 + $0x444] ss:$16 sps:$4 sm:$0xff]  }
 0x192   :  { %2256 = vmatpush2.bf16.msra.mxu0 %v5116_v32  ;;  %v5176_v32 = vld [vmem:[#allocation8 + $0x380] ss:$16 sps:$4 sm:$0xff]  }
 0x193   :  { %2257 = vmatprep.subr.bf16.mxu0 %v5124_v35  ;;  %v5269_v35 = vld [vmem:[#allocation8 + $0x440] ss:$16 sps:$4 sm:$0xff]  }
 0x194   :  { %3483 = vmatpush2.bf16.msra.mxu1 %v5137_v52  ;;  %v5277_v52 = vld [vmem:[#allocation8 + $0x424] ss:$16 sps:$4 sm:$0xff]  }
 0x195   :  { %3484 = vmatprep.subr.bf16.mxu1 %v5142_v5  ;;  %v5179_v5 = vld [vmem:[#allocation8 + $0x360] ss:$16 sps:$4 sm:$0xff]  }
 0x196   :  { %2258 = vmatpush2.bf16.msra.mxu0 %v5122_v39  ;;  %v5184_v39 = vld [vmem:[#allocation8 + $0x344] ss:$16 sps:$4 sm:$0xff]  }
 0x197   :  { %3495 = vmatprep.subr.bf16.mxu0 %v5145_v34  ;;  %v5283_v34 = vld [vmem:[#allocation8 + $0x404] ss:$16 sps:$4 sm:$0xff]  }
 0x198   :  { %3485 = vmatpush2.bf16.msra.mxu1 %v5140_v41  ;;  %v5281_v41 = vld [vmem:[#allocation8 + $0x400] ss:$16 sps:$4 sm:$0xff]  }
 0x199   :  { %v2015_v45 = vpop.f32.mrf.mxu0  ;;  %2260 = vmatmul.mubr.bf16.vlgmr.msra.gmra.mxu0 %v5698_v13  ;;  %v5154_v13 = vld [vmem:[#allocation8 + $0x284] ss:$16 sps:$4 sm:$0xff]   ;;  %3536 = vmatprep.subr.bf16.mxu1 %v5241_v3 }
 0x19a   :  { %v2016_v47 = vadd.f32 %v2015_v45, %v1975_v44  ;;  %3496 = vmatpush1.bf16.msra.mxu0 %v5143_v8  ;;  %v5289_v8 = vld [vmem:[#allocation8 + $0x5e4] ss:$16 sps:$4 sm:$0xff]   ;;  %v5185_v44 = vld [vmem:[#allocation8 + $0x320] ss:$16 sps:$4 sm:$0xff]  }
 0x19b   :  { %v2017_v49 = vpop.f32.mrf.mxu0  ;;  %3497 = vmatprep.subr.bf16.mxu0 %v5148_v43  ;;  %v5736_v51 = vpop.f32.mrf.mxu1  ;;  %v418_v43 = vsub.s32 2, %v5719_v21  ;;  %v5287_v45 = vld [vmem:[#allocation8 + $0x5e0] ss:$16 sps:$4 sm:$0xff]  }
 0x19c   :  { %v2018_v48 = vadd.f32 %v2017_v49, %v1977_v46  ;;  %5415 = vtanh.f32 %v2016_v47  ;;  %v5190_v46 = vld [vmem:[#allocation8 + $0x304] ss:$16 sps:$4 sm:$0xff]   ;;  %v422_v47 = vsub.s32 3, %v5719_v21 }
 0x19d   :  { %v2019_v53 = vpop.f32.mrf.mxu0  ;;  %v5738_v54 = vpop.f32.mrf.mxu1  ;;  %v419_v49 = vrot.slane %v5722_v28, %v418_v43 }
 0x19e   :  { %5417 = vtanh.f32 %v2018_v48  ;;  %3498 = vmatpush1.bf16.msra.mxu0 %v5146_v30  ;;  %v5295_v30 = vld [vmem:[#allocation8 + $0x5c4] ss:$16 sps:$4 sm:$0xff]   ;;  %v5293_v48 = vld [vmem:[#allocation8 + $0x5c0] ss:$16 sps:$4 sm:$0xff]   ;;  %v5193_v53 = vld [vmem:[#allocation8 + $0xec] ss:$16 sps:$4 sm:$0xff]  }
 0x19f   :  { %v2020_v55 = vpop.f32.mrf.mxu0  ;;  %3499 = vmatprep.subr.bf16.mxu0 %v5151_v50  ;;  %v2060_v37 = vpop.f32.mrf.mxu1  ;;  %v5188_v50 = vld [vmem:[#allocation8 + $0x300] ss:$16 sps:$4 sm:$0xff]  }
 0x1a0   :  { %v5301_v55 = vld [vmem:[#allocation8 + $0x5a4] ss:$16 sps:$4 sm:$0xff]   ;;  %v5299_v37 = vld [vmem:[#allocation8 + $0x5a0] ss:$16 sps:$4 sm:$0xff]  }
 0x1a1   :  { %v2061_v56 = vpop.f32.mrf.mxu1 }
 0x1a2   :  { %3500 = vmatpush1.bf16.msra.mxu0 %v5149_v33  ;;  %v423_v33 = vrot.slane %v5722_v28, %v422_v47 }
 0x1a3   :  { %3501 = vmatprep.subr.bf16.mxu0 %v5154_v13  ;;  %v2057_v13 = vadd.f32 %v5736_v51, %v419_v49  ;;  %v5313_v51 = vld [vmem:[#allocation8 + $0x564] ss:$16 sps:$4 sm:$0xff]   ;;  %v5226_v49 = vld [vmem:[#allocation8 + $0x18c] ss:$16 sps:$4 sm:$0xff]  }
 0x1a4   :  { %v2059_v56 = vadd.f32 %v5738_v54, %v423_v33 }
 0x1a6   :  { %3502 = vmatpush1.bf16.msra.mxu0 %v5152_v57 }
 0x1a7   :  { %3503 = vmatprep.subr.bf16.mxu0 %v5157_v58  ;;  %v5307_v58 = vld [vmem:[#allocation8 + $0x584] ss:$16 sps:$4 sm:$0xff]  }
 0x1a9   :  { %v5416_v61 = vpop.eup %5415 }
 0x1aa   :  { %3504 = vmatpush1.bf16.msra.mxu0 %v5155_v59  ;;  %v5742_v2 = vpack.c.bf16 %v5416_v61, %v5416_v61 }
 0x1ab   :  { %v5418_v63 = vpop.eup %5417  ;;  %3505 = vmatprep.subr.bf16.mxu0 %v5160_v60  ;;  %v5305_v60 = vld [vmem:[#allocation8 + $0x580] ss:$16 sps:$4 sm:$0xff]  }
 0x1ac   :  { %v5740_v1 = vpack.c.bf16 %v5418_v63, %v5418_v63 }
 0x1ae   :  { %3486 = vmatprep.mubr.bf16.mxu1 %v5740_v1  ;;  %3506 = vmatpush1.bf16.msra.mxu0 %v5158_v62 }
 0x1af   :  { %3487 = vmatmul.mubr.bf16.vlgmr.msra.gmra.mxu1 %v5742_v2  ;;  %3507 = vmatprep.subr.bf16.mxu0 %v5163_v0 }
 0x1b0   :  { %3537 = vmatpush1.bf16.msra.mxu1 %v5239_v6 }
 0x1b1   :  { %3538 = vmatprep.subr.bf16.mxu1 %v5247_v9 }
 0x1b2   :  { %3508 = vmatpush1.bf16.msra.mxu0 %v5161_v4 }
 0x1b3   :  { %3509 = vmatprep.subr.bf16.mxu0 %v5166_v7  ;;  %v5311_v7 = vld [vmem:[#allocation8 + $0x560] ss:$16 sps:$4 sm:$0xff]  }
 0x1b4   :  { %3539 = vmatpush1.bf16.msra.mxu1 %v5245_v11  ;;  %v5319_v11 = vld [vmem:[#allocation8 + $0x544] ss:$16 sps:$4 sm:$0xff]  }
 0x1b5   :  { %3540 = vmatprep.subr.bf16.mxu1 %v5253_v14  ;;  %v5325_v14 = vld [vmem:[#allocation8 + $0x524] ss:$16 sps:$4 sm:$0xff]  }
 0x1b6   :  { %3510 = vmatpush1.bf16.msra.mxu0 %v5164_v10 }
 0x1b7   :  { %3511 = vmatprep.subr.bf16.mxu0 %v5169_v12  ;;  %v5317_v12 = vld [vmem:[#allocation8 + $0x540] ss:$16 sps:$4 sm:$0xff]  }
 0x1b8   :  { %3541 = vmatpush1.bf16.msra.mxu1 %v5251_v16  ;;  %v5331_v16 = vld [vmem:[#allocation8 + $0x504] ss:$16 sps:$4 sm:$0xff]  }
 0x1b9   :  { %3542 = vmatprep.subr.bf16.mxu1 %v5259_v18 }
 0x1ba   :  { %3512 = vmatpush2.bf16.msra.mxu0 %v5167_v15  ;;  %v5323_v15 = vld [vmem:[#allocation8 + $0x520] ss:$16 sps:$4 sm:$0xff]  }
 0x1bb   :  { %3513 = vmatprep.subr.bf16.mxu0 %v5172_v17  ;;  %v5329_v17 = vld [vmem:[#allocation8 + $0x500] ss:$16 sps:$4 sm:$0xff]  }
 0x1bc   :  { %3543 = vmatpush1.bf16.msra.mxu1 %v5257_v20  ;;  %v5337_v20 = vld [vmem:[#allocation8 + $0x2ec] ss:$16 sps:$4 sm:$0xff]  }
 0x1bd   :  { %3544 = vmatprep.subr.bf16.mxu1 %v5265_v23  ;;  %v5191_v23 = vld [vmem:[#allocation8 + $0xe8] ss:$16 sps:$4 sm:$0xff]  }
 0x1be   :  { %3514 = vmatpush2.bf16.msra.mxu0 %v5170_v19 }
 0x1bf   :  { %3515 = vmatprep.subr.bf16.mxu0 %v5175_v22 }
 0x1c0   :  { %3545 = vmatpush1.bf16.msra.mxu1 %v5263_v25  ;;  %v5196_v25 = vld [vmem:[#allocation8 + $0xcc] ss:$16 sps:$4 sm:$0xff]  }
 0x1c1   :  { %3546 = vmatprep.subr.bf16.mxu1 %v5271_v29  ;;  %v5199_v29 = vld [vmem:[#allocation8 + $0xac] ss:$16 sps:$4 sm:$0xff]  }
 0x1c2   :  { %3516 = vmatpush2.bf16.msra.mxu0 %v5173_v24 }
 0x1c3   :  { %3517 = vmatprep.subr.bf16.mxu0 %v5178_v27  ;;  %v5194_v27 = vld [vmem:[#allocation8 + $0xc8] ss:$16 sps:$4 sm:$0xff]  }
 0x1c4   :  { %3547 = vmatpush1.bf16.msra.mxu1 %v5269_v35  ;;  %v5202_v35 = vld [vmem:[#allocation8 + $0x8c] ss:$16 sps:$4 sm:$0xff]  }
 0x1c5   :  { %3548 = vmatprep.subr.bf16.mxu1 %v5277_v52  ;;  %v5205_v52 = vld [vmem:[#allocation8 + $0x6c] ss:$16 sps:$4 sm:$0xff]  }
 0x1c6   :  { %3518 = vmatpush2.bf16.msra.mxu0 %v5176_v32  ;;  %v5197_v32 = vld [vmem:[#allocation8 + $0xa8] ss:$16 sps:$4 sm:$0xff]  }
 0x1c7   :  { %3519 = vmatprep.subr.bf16.mxu0 %v5181_v36  ;;  %v5200_v36 = vld [vmem:[#allocation8 + $0x88] ss:$16 sps:$4 sm:$0xff]  }
 0x1c8   :  { %3549 = vmatpush1.bf16.msra.mxu1 %v5275_v38  ;;  %v5208_v38 = vld [vmem:[#allocation8 + $0x4c] ss:$16 sps:$4 sm:$0xff]  }
 0x1c9   :  { %3550 = vmatprep.subr.bf16.mxu1 %v5283_v34  ;;  %v5211_v34 = vld [vmem:[#allocation8 + $0x2c] ss:$16 sps:$4 sm:$0xff]  }
 0x1ca   :  { %3520 = vmatpush2.bf16.msra.mxu0 %v5179_v5  ;;  %v5203_v5 = vld [vmem:[#allocation8 + $0x68] ss:$16 sps:$4 sm:$0xff]  }
 0x1cb   :  { %3521 = vmatprep.subr.bf16.mxu0 %v5184_v39  ;;  %v5206_v39 = vld [vmem:[#allocation8 + $0x48] ss:$16 sps:$4 sm:$0xff]  }
 0x1cc   :  { %3551 = vmatpush1.bf16.msra.mxu1 %v5281_v41  ;;  %v5212_v41 = vld [vmem:[#allocation8 + $0x8] ss:$16 sps:$4 sm:$0xff]  }
 0x1cd   :  { %3552 = vmatprep.subr.bf16.mxu1 %v5289_v8  ;;  %v5215_v8 = vld [vmem:[#allocation8 + $0x1e8] ss:$16 sps:$4 sm:$0xff]  }
 0x1ce   :  { %3522 = vmatpush2.bf16.msra.mxu0 %v5182_v40  ;;  %v5214_v40 = vld [vmem:[#allocation8 + $0xc] ss:$16 sps:$4 sm:$0xff]  }
 0x1cf   :  { %3523 = vmatprep.subr.bf16.mxu0 %v5187_v42  ;;  %v5217_v42 = vld [vmem:[#allocation8 + $0x1ec] ss:$16 sps:$4 sm:$0xff]  }
 0x1d0   :  { %3553 = vmatpush2.bf16.msra.mxu1 %v5287_v45  ;;  %v5218_v45 = vld [vmem:[#allocation8 + $0x1c8] ss:$16 sps:$4 sm:$0xff]  }
 0x1d1   :  { %3554 = vmatprep.subr.bf16.mxu1 %v5295_v30  ;;  %v5221_v30 = vld [vmem:[#allocation8 + $0x1a8] ss:$16 sps:$4 sm:$0xff]  }
 0x1d2   :  { %3524 = vmatpush2.bf16.msra.mxu0 %v5185_v44  ;;  %v5220_v44 = vld [vmem:[#allocation8 + $0x1cc] ss:$16 sps:$4 sm:$0xff]  }
 0x1d3   :  { %3525 = vmatprep.subr.bf16.mxu0 %v5190_v46  ;;  %v5223_v46 = vld [vmem:[#allocation8 + $0x1ac] ss:$16 sps:$4 sm:$0xff]  }
 0x1d4   :  { %3555 = vmatpush2.bf16.msra.mxu1 %v5293_v48  ;;  %v5224_v48 = vld [vmem:[#allocation8 + $0x188] ss:$16 sps:$4 sm:$0xff]  }
 0x1d5   :  { %3556 = vmatprep.subr.bf16.mxu1 %v5301_v55  ;;  %v5229_v55 = vld [vmem:[#allocation8 + $0x16c] ss:$16 sps:$4 sm:$0xff]  }
 0x1d6   :  { %3526 = vmatpush2.bf16.msra.mxu0 %v5188_v50 }
 0x1d7   :  { %3577 = vmatprep.subr.bf16.mxu0 %v5193_v53 }
 0x1d8   :  { %3557 = vmatpush2.bf16.msra.mxu1 %v5299_v37 }
 0x1d9   :  { %v2097_v57 = vpop.f32.mrf.mxu0  ;;  %3558 = vmatprep.subr.bf16.mxu1 %v5307_v58  ;;  %v5232_v58 = vld [vmem:[#allocation8 + $0x14c] ss:$16 sps:$4 sm:$0xff]  }
 0x1da   :  { %v2098_v59 = vadd.f32 %v2097_v57, %v2057_v13 }
 0x1db   :  { %v2099_v61 = vpop.f32.mrf.mxu0  ;;  %v2138_v62 = vpop.f32.mrf.mxu1 }
 0x1dc   :  { %v2100_v63 = vadd.f32 %v2099_v61, %v2059_v56  ;;  %v2139_v0 = vadd.f32 %v2138_v62, %v2098_v59  ;;  %3559 = vmatpush2.bf16.msra.mxu1 %v5305_v60  ;;  %v5227_v56 = vld [vmem:[#allocation8 + $0x168] ss:$16 sps:$4 sm:$0xff]   ;;  %v5235_v62 = vld [vmem:[#allocation8 + $0x12c] ss:$16 sps:$4 sm:$0xff]  }
 0x1dd   :  { %v2101_v3 = vpop.f32.mrf.mxu0  ;;  %v2140_v4 = vpop.f32.mrf.mxu1  ;;  %3560 = vmatprep.subr.bf16.mxu1 %v5313_v51  ;;  %v5230_v61 = vld [vmem:[#allocation8 + $0x148] ss:$16 sps:$4 sm:$0xff]  }
 0x1de   :  { %v2141_v6 = vadd.f32 %v2140_v4, %v2100_v63  ;;  %5419 = vtanh.f32 %v2139_v0  ;;  %v5233_v63 = vld [vmem:[#allocation8 + $0x128] ss:$16 sps:$4 sm:$0xff]   ;;  %v5238_v0 = vld [vmem:[#allocation8 + $0x10c] ss:$16 sps:$4 sm:$0xff]  }
 0x1df   :  { %v2102_v9 = vpop.f32.mrf.mxu0  ;;  %v2142_v10 = vpop.f32.mrf.mxu1  ;;  %v5236_v3 = vld [vmem:[#allocation8 + $0x108] ss:$16 sps:$4 sm:$0xff]   ;;  %v5244_v4 = vld [vmem:[#allocation8 + $0x4ec] ss:$16 sps:$4 sm:$0xff]  }
 0x1e0   :  { %5421 = vtanh.f32 %v2141_v6  ;;  %3561 = vmatpush2.bf16.msra.mxu1 %v5311_v7  ;;  %v5242_v51 = vld [vmem:[#allocation8 + $0x4e8] ss:$16 sps:$4 sm:$0xff]   ;;  %v5250_v6 = vld [vmem:[#allocation8 + $0x4cc] ss:$16 sps:$4 sm:$0xff]  }
 0x1e1   :  { %v2143_v54 = vpop.f32.mrf.mxu1  ;;  %3562 = vmatprep.subr.bf16.mxu1 %v5319_v11  ;;  %v5248_v7 = vld [vmem:[#allocation8 + $0x4c8] ss:$16 sps:$4 sm:$0xff]   ;;  %v5256_v9 = vld [vmem:[#allocation8 + $0x4ac] ss:$16 sps:$4 sm:$0xff]  }
 0x1e2   :  { %v5254_v10 = vld [vmem:[#allocation8 + $0x4a8] ss:$16 sps:$4 sm:$0xff]   ;;  %v5262_v54 = vld [vmem:[#allocation8 + $0x48c] ss:$16 sps:$4 sm:$0xff]  }
 0x1e3   :  { %v5260_v11 = vld [vmem:[#allocation8 + $0x488] ss:$16 sps:$4 sm:$0xff]  }
 0x1e4   :  { %3563 = vmatpush2.bf16.msra.mxu1 %v5317_v12  ;;  %v5268_v12 = vld [vmem:[#allocation8 + $0x46c] ss:$16 sps:$4 sm:$0xff]  }
 0x1e5   :  { %3564 = vmatprep.subr.bf16.mxu1 %v5325_v14  ;;  %v5266_v14 = vld [vmem:[#allocation8 + $0x468] ss:$16 sps:$4 sm:$0xff]  }
 0x1e8   :  { %3565 = vmatpush2.bf16.msra.mxu1 %v5323_v15  ;;  %v5274_v15 = vld [vmem:[#allocation8 + $0x44c] ss:$16 sps:$4 sm:$0xff]  }
 0x1e9   :  { %3566 = vmatprep.subr.bf16.mxu1 %v5331_v16  ;;  %v5272_v16 = vld [vmem:[#allocation8 + $0x448] ss:$16 sps:$4 sm:$0xff]  }
 0x1eb   :  { %v5420_v18 = vpop.eup %5419 }
 0x1ec   :  { %3567 = vmatpush2.bf16.msra.mxu1 %v5329_v17  ;;  %v5758_v24 = vpack.c.bf16 %v5420_v18, %v5420_v18  ;;  %v5278_v17 = vld [vmem:[#allocation8 + $0x428] ss:$16 sps:$4 sm:$0xff]   ;;  %v5286_v18 = vld [vmem:[#allocation8 + $0x40c] ss:$16 sps:$4 sm:$0xff]  }
 0x1ed   :  { %v5422_v19 = vpop.eup %5421  ;;  %3618 = vmatprep.subr.bf16.mxu1 %v5337_v20  ;;  %v5292_v20 = vld [vmem:[#allocation8 + $0x5ec] ss:$16 sps:$4 sm:$0xff]  }
 0x1ee   :  { %v5756_v22 = vpack.c.bf16 %v5422_v19, %v5422_v19  ;;  %v5284_v19 = vld [vmem:[#allocation8 + $0x408] ss:$16 sps:$4 sm:$0xff]  }
 0x1f0   :  { %3527 = vmatprep.mubr.bf16.mxu0 %v5756_v22 }
 0x1f1   :  { %3528 = vmatmul.mubr.bf16.vlgmr.msra.gmra.mxu0 %v5758_v24 }
 0x1f2   :  { %3578 = vmatpush1.bf16.msra.mxu0 %v5191_v23  ;;  %3609 = vmatprep.mubr.bf16.mxu0 %v5740_v1  ;;  %v5209_v1 = vld [vmem:[#allocation8 + $0x28] ss:$16 sps:$4 sm:$0xff]   ;;  %v426_v23 = vsub.s32 4, %v5719_v21 }
 0x1f3   :  { %3579 = vmatprep.subr.bf16.mxu0 %v5196_v25  ;;  %v430_v25 = vsub.s32 5, %v5719_v21 }
 0x1f6   :  { %3580 = vmatpush1.bf16.msra.mxu0 %v5194_v27  ;;  %v5290_v27 = vld [vmem:[#allocation8 + $0x5e8] ss:$16 sps:$4 sm:$0xff]  }
 0x1f7   :  { %3581 = vmatprep.subr.bf16.mxu0 %v5199_v29  ;;  %v5298_v29 = vld [vmem:[#allocation8 + $0x5cc] ss:$16 sps:$4 sm:$0xff]  }
 0x1fa   :  { %3582 = vmatpush1.bf16.msra.mxu0 %v5197_v32  ;;  %v427_v32 = vrot.slane %v5722_v28, %v426_v23  ;;  %v5370_v23 = vld [vmem:[#allocation8 + $0x38c] ss:$16 sps:$4 sm:$0xff]  }
 0x1fb   :  { %3583 = vmatprep.subr.bf16.mxu0 %v5202_v35  ;;  %v431_v35 = vrot.slane %v5722_v28, %v430_v25  ;;  %v5308_v28 = vld [vmem:[#allocation8 + $0x588] ss:$16 sps:$4 sm:$0xff]  }
 0x1fc   :  { %v5368_v25 = vld [vmem:[#allocation8 + $0x388] ss:$16 sps:$4 sm:$0xff]  }
 0x1fe   :  { %3584 = vmatpush1.bf16.msra.mxu0 %v5200_v36  ;;  %v5296_v36 = vld [vmem:[#allocation8 + $0x5c8] ss:$16 sps:$4 sm:$0xff]  }
 0x1ff   :  { %3585 = vmatprep.subr.bf16.mxu0 %v5205_v52  ;;  %v5304_v52 = vld [vmem:[#allocation8 + $0x5ac] ss:$16 sps:$4 sm:$0xff]  }
 0x202   :  { %3586 = vmatpush1.bf16.msra.mxu0 %v5203_v5 }
 0x203   :  { %3587 = vmatprep.subr.bf16.mxu0 %v5208_v38 }
 0x206   :  { %3588 = vmatpush1.bf16.msra.mxu0 %v5206_v39  ;;  %v5302_v39 = vld [vmem:[#allocation8 + $0x5a8] ss:$16 sps:$4 sm:$0xff]  }
 0x207   :  { %3589 = vmatprep.subr.bf16.mxu0 %v5211_v34  ;;  %v5310_v34 = vld [vmem:[#allocation8 + $0x58c] ss:$16 sps:$4 sm:$0xff]  }
 0x20a   :  { %3590 = vmatpush1.bf16.msra.mxu0 %v5209_v1 }
 0x20b   :  { %3591 = vmatprep.subr.bf16.mxu0 %v5214_v40 }
 0x20e   :  { %3592 = vmatpush1.bf16.msra.mxu0 %v5212_v41 }
 0x20f   :  { %3593 = vmatprep.subr.bf16.mxu0 %v5217_v42 }
 0x212   :  { %3594 = vmatpush2.bf16.msra.mxu0 %v5215_v8 }
 0x213   :  { %3595 = vmatprep.subr.bf16.mxu0 %v5220_v44  ;;  %v5316_v44 = vld [vmem:[#allocation8 + $0x56c] ss:$16 sps:$4 sm:$0xff]  }
 0x216   :  { %3596 = vmatpush2.bf16.msra.mxu0 %v5218_v45 }
 0x217   :  { %3597 = vmatprep.subr.bf16.mxu0 %v5223_v46 }
 0x219   :  { %v5763_v50 = vpop.f32.mrf.mxu0 }
 0x21a   :  { %3598 = vmatpush2.bf16.msra.mxu0 %v5221_v30  ;;  %v2180_v5 = vadd.f32 %v5763_v50, %v427_v32  ;;  %v5314_v30 = vld [vmem:[#allocation8 + $0x568] ss:$16 sps:$4 sm:$0xff]   ;;  %v5322_v50 = vld [vmem:[#allocation8 + $0x54c] ss:$16 sps:$4 sm:$0xff]  }
 0x21b   :  { %v5765_v53 = vpop.f32.mrf.mxu0  ;;  %v5767_v33 = vpop.f32.mrf.mxu1  ;;  %3599 = vmatprep.subr.bf16.mxu0 %v5226_v49  ;;  %v5376_v32 = vld [vmem:[#allocation8 + $0x34c] ss:$16 sps:$4 sm:$0xff]  }
 0x21c   :  { %v2182_v38 = vadd.f32 %v5765_v53, %v431_v35  ;;  %v2221_v1 = vadd.f32 %v5767_v33, %v2180_v5  ;;  %v5328_v53 = vld [vmem:[#allocation8 + $0x52c] ss:$16 sps:$4 sm:$0xff]   ;;  %v5326_v33 = vld [vmem:[#allocation8 + $0x528] ss:$16 sps:$4 sm:$0xff]  }
 0x21d   :  { %v2183_v13 = vpop.f32.mrf.mxu0  ;;  %v5769_v37 = vpop.f32.mrf.mxu1  ;;  %v5374_v35 = vld [vmem:[#allocation8 + $0x348] ss:$16 sps:$4 sm:$0xff]   ;;  %v5382_v5 = vld [vmem:[#allocation8 + $0x30c] ss:$16 sps:$4 sm:$0xff]  }
 0x21e   :  { %3600 = vmatpush2.bf16.msra.mxu0 %v5224_v48  ;;  %v2223_v41 = vadd.f32 %v5769_v37, %v2182_v38  ;;  %v5320_v48 = vld [vmem:[#allocation8 + $0x548] ss:$16 sps:$4 sm:$0xff]  }
 0x21f   :  { %v2184_v57 = vpop.f32.mrf.mxu0  ;;  %3601 = vmatprep.subr.bf16.mxu0 %v5229_v55  ;;  %v2224_v59 = vpop.f32.mrf.mxu1  ;;  %v5334_v55 = vld [vmem:[#allocation8 + $0x50c] ss:$16 sps:$4 sm:$0xff]   ;;  %v5332_v37 = vld [vmem:[#allocation8 + $0x508] ss:$16 sps:$4 sm:$0xff]  }
 0x220   :  { %v5380_v38 = vld [vmem:[#allocation8 + $0x308] ss:$16 sps:$4 sm:$0xff]  }
 0x221   :  { %v2225_v60 = vpop.f32.mrf.mxu1 }
 0x222   :  { %3602 = vmatpush2.bf16.msra.mxu0 %v5227_v56  ;;  %v5340_v60 = vld [vmem:[#allocation8 + $0x2cc] ss:$16 sps:$4 sm:$0xff]  }
 0x223   :  { %3603 = vmatprep.subr.bf16.mxu0 %v5232_v58  ;;  %v5335_v58 = vld [vmem:[#allocation8 + $0x2e8] ss:$16 sps:$4 sm:$0xff]  }
 0x226   :  { %3604 = vmatpush2.bf16.msra.mxu0 %v5230_v61 }
 0x227   :  { %3605 = vmatprep.subr.bf16.mxu0 %v5235_v62  ;;  %v5338_v62 = vld [vmem:[#allocation8 + $0x2c8] ss:$16 sps:$4 sm:$0xff]  }
 0x22a   :  { %3606 = vmatpush2.bf16.msra.mxu0 %v5233_v63 }
 0x22b   :  { %3607 = vmatprep.subr.bf16.mxu0 %v5238_v0  ;;  %v5343_v0 = vld [vmem:[#allocation8 + $0x2ac] ss:$16 sps:$4 sm:$0xff]  }
 0x22e   :  { %3608 = vmatpush2.bf16.msra.mxu0 %v5236_v3 }
 0x22f   :  { %3659 = vmatprep.subr.bf16.mxu0 %v5244_v4  ;;  %v5341_v4 = vld [vmem:[#allocation8 + $0x2a8] ss:$16 sps:$4 sm:$0xff]  }
 0x231   :  { %3610 = vmatmul.mubr.bf16.vlgmr.msra.gmra.mxu0 %v5742_v2  ;;  %v5280_v2 = vld [vmem:[#allocation8 + $0x42c] ss:$16 sps:$4 sm:$0xff]  }
 0x232   :  { %3660 = vmatpush1.bf16.msra.mxu0 %v5242_v51 }
 0x233   :  { %3661 = vmatprep.subr.bf16.mxu0 %v5250_v6  ;;  %v5346_v6 = vld [vmem:[#allocation8 + $0x28c] ss:$16 sps:$4 sm:$0xff]  }
 0x236   :  { %3662 = vmatpush1.bf16.msra.mxu0 %v5248_v7  ;;  %v5344_v7 = vld [vmem:[#allocation8 + $0x288] ss:$16 sps:$4 sm:$0xff]  }
 0x237   :  { %3663 = vmatprep.subr.bf16.mxu0 %v5256_v9  ;;  %v5349_v9 = vld [vmem:[#allocation8 + $0x26c] ss:$16 sps:$4 sm:$0xff]  }
 0x23a   :  { %3664 = vmatpush1.bf16.msra.mxu0 %v5254_v10  ;;  %v5347_v10 = vld [vmem:[#allocation8 + $0x268] ss:$16 sps:$4 sm:$0xff]  }
 0x23b   :  { %3665 = vmatprep.subr.bf16.mxu0 %v5262_v54  ;;  %v5350_v54 = vld [vmem:[#allocation8 + $0x248] ss:$16 sps:$4 sm:$0xff]  }
 0x23e   :  { %3666 = vmatpush1.bf16.msra.mxu0 %v5260_v11  ;;  %v5355_v11 = vld [vmem:[#allocation8 + $0x22c] ss:$16 sps:$4 sm:$0xff]  }
 0x23f   :  { %3667 = vmatprep.subr.bf16.mxu0 %v5268_v12  ;;  %v5353_v12 = vld [vmem:[#allocation8 + $0x228] ss:$16 sps:$4 sm:$0xff]  }
 0x242   :  { %3668 = vmatpush1.bf16.msra.mxu0 %v5266_v14  ;;  %v5358_v14 = vld [vmem:[#allocation8 + $0x20c] ss:$16 sps:$4 sm:$0xff]  }
 0x243   :  { %3669 = vmatprep.subr.bf16.mxu0 %v5274_v15  ;;  %v5356_v15 = vld [vmem:[#allocation8 + $0x208] ss:$16 sps:$4 sm:$0xff]  }
 0x246   :  { %3670 = vmatpush1.bf16.msra.mxu0 %v5272_v16  ;;  %v5361_v16 = vld [vmem:[#allocation8 + $0x3ec] ss:$16 sps:$4 sm:$0xff]  }
 0x247   :  { %3671 = vmatprep.subr.bf16.mxu0 %v5280_v2  ;;  %v5359_v2 = vld [vmem:[#allocation8 + $0x3e8] ss:$16 sps:$4 sm:$0xff]  }
 0x24a   :  { %3672 = vmatpush1.bf16.msra.mxu0 %v5278_v17  ;;  %v5364_v17 = vld [vmem:[#allocation8 + $0x3cc] ss:$16 sps:$4 sm:$0xff]  }
 0x24b   :  { %3673 = vmatprep.subr.bf16.mxu0 %v5286_v18  ;;  %v5362_v18 = vld [vmem:[#allocation8 + $0x3c8] ss:$16 sps:$4 sm:$0xff]  }
 0x24e   :  { %3674 = vmatpush1.bf16.msra.mxu0 %v5284_v19  ;;  %v5367_v19 = vld [vmem:[#allocation8 + $0x3ac] ss:$16 sps:$4 sm:$0xff]  }
 0x24f   :  { %3675 = vmatprep.subr.bf16.mxu0 %v5292_v20  ;;  %v5365_v20 = vld [vmem:[#allocation8 + $0x3a8] ss:$16 sps:$4 sm:$0xff]  }
 0x252   :  { %3676 = vmatpush2.bf16.msra.mxu0 %v5290_v27  ;;  %v5373_v27 = vld [vmem:[#allocation8 + $0x36c] ss:$16 sps:$4 sm:$0xff]  }
 0x253   :  { %3677 = vmatprep.subr.bf16.mxu0 %v5298_v29  ;;  %v5371_v29 = vld [vmem:[#allocation8 + $0x368] ss:$16 sps:$4 sm:$0xff]  }
 0x256   :  { %3678 = vmatpush2.bf16.msra.mxu0 %v5296_v36  ;;  %v5379_v36 = vld [vmem:[#allocation8 + $0x32c] ss:$16 sps:$4 sm:$0xff]  }
 0x257   :  { %3679 = vmatprep.subr.bf16.mxu0 %v5304_v52  ;;  %v5377_v52 = vld [vmem:[#allocation8 + $0x328] ss:$16 sps:$4 sm:$0xff]  }
 0x259   :  { %v2261_v40 = vpop.f32.mrf.mxu0 }
 0x25a   :  { %v2262_v42 = vadd.f32 %v2261_v40, %v2221_v1  ;;  %3680 = vmatpush2.bf16.msra.mxu0 %v5302_v39  ;;  %v5785_v39 = vld [vmem:[#allocation10] sm:$0xf] }
 0x25b   :  { %v2263_v8 = vpop.f32.mrf.mxu0  ;;  %3681 = vmatprep.subr.bf16.mxu0 %v5310_v34  ;;  %v5383_v34 = vld [vmem:[#allocation11 + $0x78] sm:$0xff]   ;;  %v2477_v1 = vrot.slane %v5785_v39, %v410_v26 }
 0x25c   :  { %v2264_v45 = vadd.f32 %v2263_v8, %v2223_v41  ;;  %5423 = vtanh.f32 %v2262_v42  ;;  %v5384_v40 = vld [vmem:[#allocation11 + $0x38] sm:$0xff]   ;;  %v5385_v41 = vld [vmem:[#allocation11 + $0x70] sm:$0xff]   ;;  %v2481_v42 = vrot.slane %v5785_v39, %v414_v31 }
 0x25d   :  { %v2265_v46 = vpop.f32.mrf.mxu0  ;;  %v5386_v8 = vld [vmem:[#allocation11 + $0x30] sm:$0xff]  }
 0x25e   :  { %5425 = vtanh.f32 %v2264_v45  ;;  %3682 = vmatpush2.bf16.msra.mxu0 %v5308_v28  ;;  %v5387_v45 = vld [vmem:[#allocation11 + $0x68] sm:$0xff]  }
 0x25f   :  { %v2266_v49 = vpop.f32.mrf.mxu0  ;;  %3683 = vmatprep.subr.bf16.mxu0 %v5316_v44 }
 0x262   :  { %3684 = vmatpush2.bf16.msra.mxu0 %v5314_v30 }
 0x263   :  { %3685 = vmatprep.subr.bf16.mxu0 %v5322_v50  ;;  %v5388_v50 = vld [vmem:[#allocation11 + $0x28] sm:$0xff]  }
 0x266   :  { %3686 = vmatpush2.bf16.msra.mxu0 %v5320_v48 }
 0x267   :  { %3687 = vmatprep.subr.bf16.mxu0 %v5328_v53  ;;  %v5389_v53 = vld [vmem:[#allocation11 + $0x60] sm:$0xff]  }
 0x269   :  { %v5424_v13 = vpop.eup %5423 }
 0x26a   :  { %3688 = vmatpush2.bf16.msra.mxu0 %v5326_v33  ;;  %v2278_v59 = vpack.c.bf16 %v5424_v13, %v5424_v13  ;;  %v5391_v33 = vld [vmem:[#allocation11 + $0x58] sm:$0xff]   ;;  %v5393_v13 = vld [vmem:[#allocation11 + $0x50] sm:$0xff]  }
 0x26b   :  { %v5426_v56 = vpop.eup %5425  ;;  %3689 = vmatprep.subr.bf16.mxu0 %v5334_v55  ;;  %v5392_v55 = vld [vmem:[#allocation11 + $0x18] sm:$0xff]  }
 0x26c   :  { %v2279_v57 = vpack.c.bf16 %v5426_v56, %v5426_v56  ;;  %v5395_v56 = vld [vmem:[#allocation11 + $0x48] sm:$0xff]  }
 0x26e   :  { %3690 = vmatpush2.bf16.msra.mxu0 %v5332_v37  ;;  %3568 = vmatprep.mubr.bf16.mxu1 %v2279_v57  ;;  %v5394_v37 = vld [vmem:[#allocation11 + $0x10] sm:$0xff]  }
 0x26f   :  { %3691 = vmatprep.mubr.bf16.mxu0 %v2279_v57  ;;  %v5780_v61 = vpop.f32.mrf.mxu1  ;;  %3569 = vmatmul.mubr.bf16.vlgmr.msra.gmra.mxu1 %v2278_v59  ;;  %v5396_v57 = vld [vmem:[#allocation11 + $0x8] sm:$0xff]  }
 0x270   :  { %3619 = vmatpush1.bf16.msra.mxu1 %v5335_v58  ;;  %3650 = vmatprep.mubr.bf16.mxu1 %v5756_v22  ;;  %v5352_v22 = vld [vmem:[#allocation8 + $0x24c] ss:$16 sps:$4 sm:$0xff]   ;;  %v3489_v28 = vadd.f32 %v5780_v61, %v2477_v1  ;;  %v5397_v58 = vld [vmem:[#allocation11 + $0x40] sm:$0xff]   ;;  %v2489_v1 = vrot.slane %v5785_v39, %v422_v47 }
 0x271   :  { %3692 = vmatmul.mubr.bf16.vlgmr.msra.gmra.mxu0 %v2278_v59  ;;  %v5783_v63 = vpop.f32.mrf.mxu1  ;;  %3620 = vmatprep.subr.bf16.mxu1 %v5340_v60  ;;  %v5398_v59 = vld [vmem:[#allocation11] sm:$0xff]   ;;  %v5399_v60 = vld [vmem:[#allocation11 + $0xf8] sm:$0xff]  }
 0x272   :  { %v3491_v46 = vadd.f32 %v5783_v63, %v2481_v42 }
 0x273   :  { %v3492_v3 = vpop.f32.mrf.mxu1 }
 0x274   :  { %3621 = vmatpush1.bf16.msra.mxu1 %v5338_v62 }
 0x275   :  { %v3493_v51 = vpop.f32.mrf.mxu1  ;;  %3622 = vmatprep.subr.bf16.mxu1 %v5343_v0 }
 0x278   :  { %3623 = vmatpush1.bf16.msra.mxu1 %v5341_v4 }
 0x279   :  { %3624 = vmatprep.subr.bf16.mxu1 %v5346_v6 }
 0x27c   :  { %3625 = vmatpush1.bf16.msra.mxu1 %v5344_v7 }
 0x27d   :  { %3626 = vmatprep.subr.bf16.mxu1 %v5349_v9 }
 0x280   :  { %3627 = vmatpush1.bf16.msra.mxu1 %v5347_v10 }
 0x281   :  { %3628 = vmatprep.subr.bf16.mxu1 %v5352_v22 }
 0x284   :  { %3629 = vmatpush1.bf16.msra.mxu1 %v5350_v54 }
 0x285   :  { %3630 = vmatprep.subr.bf16.mxu1 %v5355_v11 }
 0x288   :  { %3631 = vmatpush1.bf16.msra.mxu1 %v5353_v12 }
 0x289   :  { %3632 = vmatprep.subr.bf16.mxu1 %v5358_v14 }
 0x28c   :  { %3633 = vmatpush1.bf16.msra.mxu1 %v5356_v15  ;;  %v5400_v15 = vld [vmem:[#allocation11 + $0xb8] sm:$0xff]  }
 0x28d   :  { %3634 = vmatprep.subr.bf16.mxu1 %v5361_v16 }
 0x290   :  { %3635 = vmatpush2.bf16.msra.mxu1 %v5359_v2 }
 0x291   :  { %3636 = vmatprep.subr.bf16.mxu1 %v5364_v17  ;;  %v5401_v17 = vld [vmem:[#allocation11 + $0xf0] sm:$0xff]  }
 0x294   :  { %3637 = vmatpush2.bf16.msra.mxu1 %v5362_v18  ;;  %v5402_v18 = vld [vmem:[#allocation11 + $0xb0] sm:$0xff]  }
 0x295   :  { %3638 = vmatprep.subr.bf16.mxu1 %v5367_v19  ;;  %v5403_v19 = vld [vmem:[#allocation11 + $0xe8] sm:$0xff]  }
 0x298   :  { %3639 = vmatpush2.bf16.msra.mxu1 %v5365_v20  ;;  %v5404_v20 = vld [vmem:[#allocation11 + $0xa8] sm:$0xff]  }
 0x299   :  { %3640 = vmatprep.subr.bf16.mxu1 %v5370_v23  ;;  %v5405_v23 = vld [vmem:[#allocation11 + $0xe0] sm:$0xff]  }
 0x29c   :  { %3641 = vmatpush2.bf16.msra.mxu1 %v5368_v25  ;;  %v5406_v25 = vld [vmem:[#allocation11 + $0xa0] sm:$0xff]  }
 0x29d   :  { %3642 = vmatprep.subr.bf16.mxu1 %v5373_v27  ;;  %v5407_v27 = vld [vmem:[#allocation11 + $0xd8] sm:$0xff]  }
 0x2a0   :  { %3643 = vmatpush2.bf16.msra.mxu1 %v5371_v29  ;;  %v5408_v29 = vld [vmem:[#allocation11 + $0x98] sm:$0xff]  }
 0x2a1   :  { %3644 = vmatprep.subr.bf16.mxu1 %v5376_v32  ;;  %v5409_v32 = vld [vmem:[#allocation11 + $0xd0] sm:$0xff]  }
 0x2a4   :  { %3645 = vmatpush2.bf16.msra.mxu1 %v5374_v35  ;;  %v5410_v35 = vld [vmem:[#allocation11 + $0x90] sm:$0xff]  }
 0x2a5   :  { %3646 = vmatprep.subr.bf16.mxu1 %v5379_v36  ;;  %v5411_v36 = vld [vmem:[#allocation11 + $0xc8] sm:$0xff]  }
 0x2a8   :  { %3647 = vmatpush2.bf16.msra.mxu1 %v5377_v52  ;;  %v5412_v52 = vld [vmem:[#allocation11 + $0x88] sm:$0xff]  }
 0x2a9   :  { %3648 = vmatprep.subr.bf16.mxu1 %v5382_v5  ;;  %v5413_v5 = vld [vmem:[#allocation11 + $0xc0] sm:$0xff]  }
 0x2ac   :  { %3649 = vmatpush2.bf16.msra.mxu1 %v5380_v38  ;;  %v5414_v38 = vld [vmem:[#allocation11 + $0x80] sm:$0xff]  }
 0x2ad   :  { %4599 = vmatprep.subr.bf16.mxu1 %v5383_v34  ;;  %v2485_v34 = vrot.slane %v5785_v39, %v418_v43 }
 0x2af   :  { %3651 = vmatmul.mubr.bf16.vlgmr.msra.gmra.mxu1 %v5758_v24  ;;  %v5390_v24 = vld [vmem:[#allocation11 + $0x20] sm:$0xff]  }
 0x2b0   :  { %4600 = vmatpush3.bf16.msra.mxu1 %v5384_v40 }
 0x2b1   :  { %v3529_v44 = vpop.f32.mrf.mxu0  ;;  %4601 = vmatprep.subr.bf16.mxu1 %v5385_v41 }
 0x2b2   :  { %v3530_v26 = vadd.f32 %v3529_v44, %v3489_v28 }
 0x2b3   :  { %v3531_v30 = vpop.f32.mrf.mxu0 }
 0x2b4   :  { %v3532_v49 = vadd.f32 %v3531_v30, %v3491_v46  ;;  %4602 = vmatpush3.bf16.msra.mxu1 %v5386_v8 }
 0x2b5   :  { %v3533_v48 = vpop.f32.mrf.mxu0  ;;  %4603 = vmatprep.subr.bf16.mxu1 %v5387_v45 }
 0x2b7   :  { %v3534_v31 = vpop.f32.mrf.mxu0 }
 0x2b8   :  { %4604 = vmatpush3.bf16.msra.mxu1 %v5388_v50 }
 0x2b9   :  { %4605 = vmatprep.subr.bf16.mxu1 %v5389_v53 }
 0x2bc   :  { %4606 = vmatpush3.bf16.msra.mxu1 %v5390_v24  ;;  %v4566_v24 = vld [vmem:[#allocation13] ss:$0 sm:$0xff] }
 0x2bd   :  { %4607 = vmatprep.subr.bf16.mxu1 %v5391_v33 }
 0x2c0   :  { %4608 = vmatpush3.bf16.msra.mxu1 %v5392_v55 }
 0x2c1   :  { %4609 = vmatprep.subr.bf16.mxu1 %v5393_v13 }
 0x2c4   :  { %4610 = vmatpush3.bf16.msra.mxu1 %v5394_v37 }
 0x2c5   :  { %4611 = vmatprep.subr.bf16.mxu1 %v5395_v56 }
 0x2c8   :  { %4612 = vmatpush3.bf16.msra.mxu1 %v5396_v57 }
 0x2c9   :  { %4613 = vmatprep.subr.bf16.mxu1 %v5397_v58 }
 0x2cc   :  { %4614 = vmatpush3.bf16.msra.mxu1 %v5398_v59 }
 0x2cd   :  { %4621 = vmatprep.subr.bf16.mxu1 %v5399_v60 }
 0x2f1   :  { %v3611_v61 = vpop.f32.mrf.mxu0 }
 0x2f2   :  { %v3612_v40 = vadd.f32 %v3611_v61, %v2485_v34 }
 0x2f3   :  { %v3613_v62 = vpop.f32.mrf.mxu0 }
 0x2f4   :  { %v3614_v42 = vadd.f32 %v3613_v62, %v2489_v1 }
 0x2f5   :  { %v3615_v63 = vpop.f32.mrf.mxu0 }
 0x2f7   :  { %v3616_v0 = vpop.f32.mrf.mxu0 }
 0x32f   :  { %v3570_v3 = vpop.f32.mrf.mxu1 }
 0x330   :  { %v3571_v4 = vadd.f32 %v3570_v3, %v3530_v26 }
 0x331   :  { %v3693_v51 = vpop.f32.mrf.mxu0  ;;  %v3572_v6 = vpop.f32.mrf.mxu1 }
 0x332   :  { %v3573_v7 = vadd.f32 %v3572_v6, %v3532_v49  ;;  %v3700_v9 = vmax.f32 %v3571_v4, 0.0 }
 0x333   :  { %v3695_v10 = vpop.f32.mrf.mxu0  ;;  %v3574_v22 = vpop.f32.mrf.mxu1 }
 0x334   :  { %v3701_v54 = vmax.f32 %v3573_v7, 0.0  ;;  %v3704_v16 = vpack.c.bf16 %v3700_v9, %v3700_v9 }
 0x335   :  { %v3697_v11 = vpop.f32.mrf.mxu0  ;;  %v3575_v12 = vpop.f32.mrf.mxu1 }
 0x336   :  { %v3705_v14 = vpack.c.bf16 %v3701_v54, %v3701_v54 }
 0x337   :  { %v3698_v2 = vpop.f32.mrf.mxu0 }
 0x338   :  { %4003 = vmatprep.mubr.bf16.mxu1 %v3705_v14 }
 0x339   :  { %4004 = vmatmul.mubr.bf16.vlgmr.msra.gmra.mxu1 %v3704_v16 }
 0x33a   :  { %4622 = vmatpush3.bf16.msra.mxu1 %v5400_v15 }
 0x33b   :  { %4623 = vmatprep.subr.bf16.mxu1 %v5401_v17 }
 0x33e   :  { %4624 = vmatpush3.bf16.msra.mxu1 %v5402_v18 }
 0x33f   :  { %4625 = vmatprep.subr.bf16.mxu1 %v5403_v19 }
 0x342   :  { %4626 = vmatpush3.bf16.msra.mxu1 %v5404_v20 }
 0x343   :  { %4627 = vmatprep.subr.bf16.mxu1 %v5405_v23 }
 0x346   :  { %4628 = vmatpush3.bf16.msra.mxu1 %v5406_v25 }
 0x347   :  { %4629 = vmatprep.subr.bf16.mxu1 %v5407_v27 }
 0x34a   :  { %4630 = vmatpush3.bf16.msra.mxu1 %v5408_v29 }
 0x34b   :  { %4631 = vmatprep.subr.bf16.mxu1 %v5409_v32 }
 0x34e   :  { %4632 = vmatpush3.bf16.msra.mxu1 %v5410_v35 }
 0x34f   :  { %4633 = vmatprep.subr.bf16.mxu1 %v5411_v36 }
 0x352   :  { %4634 = vmatpush3.bf16.msra.mxu1 %v5412_v52 }
 0x353   :  { %4635 = vmatprep.subr.bf16.mxu1 %v5413_v5 }
 0x356   :  { %4636 = vmatpush3.bf16.msra.mxu1 %v5414_v38 }
 0x36f   :  { %v3652_v41 = vpop.f32.mrf.mxu1 }
 0x370   :  { %v3653_v28 = vadd.f32 %v3652_v41, %v3612_v40 }
 0x371   :  { %v3654_v8 = vpop.f32.mrf.mxu1 }
 0x372   :  { %v3694_v44 = vadd.f32 %v3693_v51, %v3653_v28  ;;  %v3655_v45 = vadd.f32 %v3654_v8, %v3614_v42 }
 0x373   :  { %v3656_v46 = vpop.f32.mrf.mxu1 }
 0x374   :  { %v3696_v26 = vadd.f32 %v3695_v10, %v3655_v45  ;;  %v3702_v30 = vmax.f32 %v3694_v44, 0.0 }
 0x375   :  { %v3657_v49 = vpop.f32.mrf.mxu1 }
 0x376   :  { %v3703_v50 = vmax.f32 %v3696_v26, 0.0  ;;  %v3706_v53 = vpack.c.bf16 %v3702_v30, %v3702_v30 }
 0x378   :  { %v3707_v48 = vpack.c.bf16 %v3703_v50, %v3703_v50 }
 0x37a   :  { %4043 = vmatprep.mubr.bf16.mxu1 %v3707_v48 }
 0x37b   :  { %4044 = vmatmul.mubr.bf16.vlgmr.msra.gmra.mxu1 %v3706_v53 }
 0x3f9   :  { %v4615_v43 = vpop.f32.mrf.mxu1 }
 0x3fb   :  { %v4616_v21 = vpop.f32.mrf.mxu1 }
 0x3fc   :  { %v4617_v31 = vadd.f32 %v4616_v21, %v4615_v43 }
 0x3fd   :  { %v4618_v47 = vpop.f32.mrf.mxu1 }
 0x3fe   :  { %v4006_v13 = vadd.f32 %v4617_v31, %v4566_v24 }
 0x3ff   :  { %v4619_v39 = vpop.f32.mrf.mxu1 }
 0x43b   :  { %v4637_v33 = vpop.f32.mrf.mxu1 }
 0x43d   :  { %v4638_v55 = vpop.f32.mrf.mxu1 }
 0x43e   :  { %v4639_v37 = vadd.f32 %v4638_v55, %v4637_v33 }
 0x43f   :  { %v4640_v56 = vpop.f32.mrf.mxu1 }
 0x440   :  { %v4046_v57 = vadd.f32 %v4639_v37, %v4006_v13 }
 0x441   :  { %v4641_v58 = vpop.f32.mrf.mxu1 }
 0x442   :  { %4051 = vmax.xlane.f32.xlu0 %v4046_v57 }
 0x4cb   :  { %v4052_v59 = vpop.xlane.xlu0 %4051 }
 0x4cc   :  { %v4053_v60 = vsub.f32 %v4046_v57, %v4052_v59 }
 0x4ce   :  { %v4054_v61 = vmul.f32 1.442695, %v4053_v60 }
 0x4d0   :  { %5427 = vpow2.f32 %v4054_v61 }
 0x4dd   :  { %v5428_v62 = vpop.eup %5427 }
 0x4de   :  { %4056 = vadd.xlane.f32.xlu0 %v5428_v62 }
 0x567   :  { %v4057_v63 = vpop.xlane.xlu0 %4056 }
 0x568   :  { %5429 = vlog2.f32 %v4057_v63 }
 0x575   :  { %v5430_v0 = vpop.eup %5429 }
 0x576   :  { %v4059_v3 = vmul.f32 0.6931472, %v5430_v0 }
 0x578   :  { %v4060_v4 = vsub.f32 %v4053_v60, %v4059_v3 }
 0x57a   :  { %4061 = vst [vmem:[#allocation14] sm:$0xff] %v4060_v4 }
 0x57b   :  { %5582 = shalt.err (!%p5579_p11)
}
 0x57c   :  { %4071 = dma.vmem_to_hbm [thread:$0]  %s4069_s6, 128, %s5812_s7, [#allocation4]  }
 0x57d   :  { %5599 = dma.done.wait [#allocation4], 128  }
 0x57e   :  { %5600 = vsyncadd [#allocation4], 4294967168 }
 0x57f   :  { %4075 = vsyncpa [#allocation3], 1 }
 0x580   :  { %4076 = vsyncpa [#allocation6], 1 }
 0x581   :  { %4077 = vsyncpa [#allocation9], 1 }
 0x582   :  { %4078 = vsyncpa [#allocation12], 1 }
 0x583   :  { %4079 = vsyncpa [#allocation4], 1 }

</bundles_post_ra>
